<compile_context>
chip_gen: v5e
topology: v5e:2x2
jax: 0.10.0
libtpu: 0.0.40
codegen_flags: <defaults>
</compile_context>

<pallas_src>
import jax
import jax.numpy as jnp
from jax.experimental import pallas as pl
from jax.experimental.pallas import tpu as pltpu


# ----------------------------- configuration --------------------------------
B = 2          # batch
C = 4          # image channels
H = W = 16     # spatial
K = 3          # conv kernel size (pad=1, stride=1)
F = 32         # in_ch_ef  (backbone feature dim)
META_D1 = 32   # n_meta_dim[0]
META_D2 = 16   # n_meta_dim[1]  == in_ch_meta
OUT_DIM = 8    # Setup_3d.out_dim
OUT_DIM2 = 4   # Setup_3d.out_dim2
BN_EPS = 1e-5

HW = H * W                          # 256
PATCH = C * K * K                   # 36
PATCH2 = 2 * PATCH                  # 72  (two images lane-packed)
FF = 2 * F                          # 64  ([f1|f2] width)
HEADS_D = OUT_DIM + 2 * OUT_DIM2    # 16  (packed head output width)

_VMEM = pl.BlockSpec(memory_space=pltpu.MemorySpace.VMEM)


def _swish(x):
    # Swish.forward: i * sigmoid(i)
    return x * jax.nn.sigmoid(x)


# --------------------------- fused forward kernel ----------------------------
def _fused_kernel(pat_ref, xmeta_ref, cw_ref, cb_ref,
                  mw1_ref, mb1_ref, mw2_ref, mb2_ref,
                  whff_ref, whxm_ref, bh_ref, out_ref):
    # ---- backbone: per-batch segment matmul -> swish -> MXU pooling ---------
    # pat: (B*HW, 2*PATCH) bf16, cw: (2*PATCH, 2F) bf16 block-diagonal, so the
    # per-pixel output columns are [img0 features | img1 features].
    inv_hw = 1.0 / float(HW)
    pool_row = jnp.full((1, HW), inv_hw, jnp.float32)   # hoisted constant
    cw = cw_ref[...]
    cb = cb_ref[...]

    pooled_rows = []
    for b in range(B):                                   # 2 unrolled segments
        seg = pat_ref[b * HW:(b + 1) * HW, :]            # (256, 72) bf16
        y = jnp.dot(seg, cw, preferred_element_type=jnp.float32) + cb
        y = _swish(y)                                    # (256, 64) f32
        # Global average pool for this batch: one tiny MXU matmul (keeps the
        # XLU / store slots free; result row is already [f1|f2]).
        pooled_rows.append(
            jnp.dot(pool_row, y, preferred_element_type=jnp.float32))
    pooled = jnp.concatenate(pooled_rows, axis=0)        # (B, 2F) = [f1|f2]

    # ---- meta MLP: Linear(+folded BN)-Swish-Linear(+folded BN)-Swish --------
    # (Dropout(p=0.3) is identity in eval mode.)  The fan-in-2 layer is two
    # broadcast FMAs on the VPU — bit-identical to the f32 matmul.
    h = (xmeta_ref[:, 0:1] * mw1_ref[0:1, :]
         + xmeta_ref[:, 1:2] * mw1_ref[1:2, :]
         + mb1_ref[...])
    h = _swish(h)                                        # (B, 32)
    xm = jnp.dot(h, mw2_ref[...],
                 preferred_element_type=jnp.float32) + mb2_ref[...]
    xm = _swish(xm)                                      # (B, 16)

    # ---- all three FC heads as a split 3-term sum ----------------------------
    # columns [0:8]  = fc_outdim1_modal(modal_meta)
    # columns [8:12] = fc_outdim2_modal(modal_meta)
    # columns [12:16]= fc_outdim2_multi(close_meta)  (f2 rows of whff are zero)
    # 5 x Dropout(p=0) accumulation / 5  ==  single application.
    out_ref[...] = (
        jnp.dot(pooled, whff_ref[...], preferred_element_type=jnp.float32)
        + jnp.dot(xm, whxm_ref[...], preferred_element_type=jnp.float32)
        + bh_ref[...])


# --------------------------- host-side layout glue ---------------------------
def _im2col_lanepacked(x0, x1):
    # Per image: NCHW -> (B, HW, C*K*K), feature index = c*K*K + kh*K + kw
    # (matches PyTorch conv weight.reshape(F, C*K*K)).  The two images are
    # concatenated along the LANE axis -> (B*HW, 2*PATCH), cast to bf16.
    def one(x):
        xp = jnp.pad(x, ((0, 0), (0, 0), (1, 1), (1, 1)))        # (B,C,H+2,W+2)
        taps = [xp[:, :, dh:dh + H, dw:dw + W]
                for dh in range(K) for dw in range(K)]
        p = jnp.stack(taps, axis=2)                              # (B, C, 9, H, W)
        p = p.transpose(0, 3, 4, 1, 2)                           # (B, H, W, C, 9)
        return p.reshape(B, HW, PATCH)

    pat2 = jnp.concatenate([one(x0), one(x1)], axis=-1)          # (B, HW, 2*PATCH)
    return pat2.reshape(B * HW, PATCH2).astype(jnp.bfloat16)


# ------------------------------- full forward --------------------------------
def mmc_net_forward(params, x0, x1, x_meta):
    pat = _im2col_lanepacked(x0, x1)

    out_all = pl.pallas_call(
        _fused_kernel,
        out_shape=jax.ShapeDtypeStruct((B, HEADS_D), jnp.float32),
        in_specs=[_VMEM] * 11,
        out_specs=_VMEM,
        cost_estimate=pl.CostEstimate(
            flops=4_900_000, transcendentals=33_000, bytes_accessed=95_000),
    )(pat, x_meta,
      params["conv_w2"], params["conv_b2"],
      params["mw1"], params["mb1"], params["mw2"], params["mb2"],
      params["wh_ff"], params["wh_xm"], params["b_heads"])

    out = out_all[:, :OUT_DIM]
    out2 = out_all[:, OUT_DIM:OUT_DIM + OUT_DIM2]
    out3 = out_all[:, OUT_DIM + OUT_DIM2:]
    return out, out2, out3


# ------------------------------ parameter init -------------------------------
def init_raw_params(key):
    ks = jax.random.split(key, 10)

    def lin(k, fan_in, fan_out):
        bound = 1.0 / jnp.sqrt(fan_in)
        kw, kb = jax.random.split(k)
        w = jax.random.uniform(kw, (fan_in, fan_out), jnp.float32, -bound, bound)
        b = jax.random.uniform(kb, (1, fan_out), jnp.float32, -bound, bound)
        return w, b

    # backbone conv: PyTorch layout (F, C, K, K) -> matmul weight (C*K*K, F)
    cbound = 1.0 / (C * K * K) ** 0.5
    conv_w_t = jax.random.uniform(ks[0], (F, C, K, K), jnp.float32, -cbound, cbound)
    conv_w = conv_w_t.reshape(F, C * K * K).T
    conv_b = jax.random.uniform(ks[1], (1, F), jnp.float32, -cbound, cbound)

    meta_w1, meta_b1 = lin(ks[2], 2, META_D1)
    meta_w2, meta_b2 = lin(ks[3], META_D1, META_D2)
    fc1m_w, fc1m_b = lin(ks[4], FF + META_D2, OUT_DIM)       # fc_outdim1_modal
    fc2m_w, fc2m_b = lin(ks[5], FF + META_D2, OUT_DIM2)      # fc_outdim2_modal
    fc2u_w, fc2u_b = lin(ks[6], F + META_D2, OUT_DIM2)       # fc_outdim2_multi

    ones = lambda d: jnp.ones((1, d), jnp.float32)
    zeros = lambda d: jnp.zeros((1, d), jnp.float32)
    return {
        "conv_w": conv_w, "conv_b": conv_b,
        "meta_w1": meta_w1, "meta_b1": meta_b1,
        "bn1_g": ones(META_D1), "bn1_b": zeros(META_D1),
        "bn1_m": zeros(META_D1), "bn1_v": ones(META_D1),
        "meta_w2": meta_w2, "meta_b2": meta_b2,
        "bn2_g": ones(META_D2), "bn2_b": zeros(META_D2),
        "bn2_m": zeros(META_D2), "bn2_v": ones(META_D2),
        "fc1m_w": fc1m_w, "fc1m_b": fc1m_b,
        "fc2m_w": fc2m_w, "fc2m_b": fc2m_b,
        "fc2u_w": fc2u_w, "fc2u_b": fc2u_b,
    }


def prepare_params(raw):
    """Fold eval-mode BN into the meta linears, pack the block-diagonal conv
    weight (bf16), and split the three FC heads into [f1|f2]-rows / xm-rows."""
    # --- BN folding (exact, eval mode) ---
    s1 = raw["bn1_g"] * jax.lax.rsqrt(raw["bn1_v"] + BN_EPS)
    s2 = raw["bn2_g"] * jax.lax.rsqrt(raw["bn2_v"] + BN_EPS)
    mw1 = raw["meta_w1"] * s1
    mb1 = (raw["meta_b1"] - raw["bn1_m"]) * s1 + raw["bn1_b"]
    mw2 = raw["meta_w2"] * s2
    mb2 = (raw["meta_b2"] - raw["bn2_m"]) * s2 + raw["bn2_b"]

    # --- block-diagonal conv weight for the lane-packed two-image matmul ---
    cw2 = jnp.zeros((PATCH2, FF), jnp.float32)
    cw2 = cw2.at[:PATCH, :F].set(raw["conv_w"])
    cw2 = cw2.at[PATCH:, F:].set(raw["conv_w"])
    cw2 = cw2.astype(jnp.bfloat16)                           # MXU bf16 operand
    cb2 = jnp.concatenate([raw["conv_b"], raw["conv_b"]], axis=1)

    # --- heads split by row group: [f1|f2] rows (FF wide) and xm rows ---
    # modal_meta = [f1 | f2 | xm]; close_meta = [f1 | xm] (multi head f2 rows = 0)
    wh_ff = jnp.zeros((FF, HEADS_D), jnp.float32)
    wh_ff = wh_ff.at[:, :OUT_DIM].set(raw["fc1m_w"][:FF])
    wh_ff = wh_ff.at[:, OUT_DIM:OUT_DIM + OUT_DIM2].set(raw["fc2m_w"][:FF])
    wh_ff = wh_ff.at[:F, OUT_DIM + OUT_DIM2:].set(raw["fc2u_w"][:F])

    wh_xm = jnp.zeros((META_D2, HEADS_D), jnp.float32)
    wh_xm = wh_xm.at[:, :OUT_DIM].set(raw["fc1m_w"][FF:])
    wh_xm = wh_xm.at[:, OUT_DIM:OUT_DIM + OUT_DIM2].set(raw["fc2m_w"][FF:])
    wh_xm = wh_xm.at[:, OUT_DIM + OUT_DIM2:].set(raw["fc2u_w"][F:])

    b_heads = jnp.concatenate(
        [raw["fc1m_b"], raw["fc2m_b"], raw["fc2u_b"]], axis=1)

    return {
        "conv_w2": cw2, "conv_b2": cb2,
        "mw1": mw1, "mb1": mb1, "mw2": mw2, "mb2": mb2,
        "wh_ff": wh_ff, "wh_xm": wh_xm, "b_heads": b_heads,
    }


if __name__ == "__main__":
    key = jax.random.PRNGKey(0)
    kp, kx0, kx1, km = jax.random.split(key, 4)
    params = prepare_params(init_raw_params(kp))
    x0 = jax.random.normal(kx0, (B, C, H, W), jnp.float32)   # x[0]  NCHW
    x1 = jax.random.normal(kx1, (B, C, H, W), jnp.float32)   # x[1]  NCHW
    x_meta = jax.random.normal(km, (B, 2), jnp.float32)

    out, out2, out3 = jax.jit(mmc_net_forward)(params, x0, x1, x_meta)
    jax.block_until_ready((out, out2, out3))
    assert out.shape == (B, OUT_DIM) and out2.shape == (B, OUT_DIM2) \
        and out3.shape == (B, OUT_DIM2)
    assert bool(jnp.all(jnp.isfinite(out))) and bool(jnp.all(jnp.isfinite(out2))) \
        and bool(jnp.all(jnp.isfinite(out3)))
    print("KERNEL_OK")
</pallas_src>

<mosaic_0001>
module attributes {stable_mosaic.version = 11 : i64} {
  func.func @_fused_kernel(%arg0: memref<512x72xbf16, #tpu.memory_space<vmem>>, %arg1: memref<2x2xf32, #tpu.memory_space<vmem>>, %arg2: memref<72x64xbf16, #tpu.memory_space<vmem>>, %arg3: memref<1x64xf32, #tpu.memory_space<vmem>>, %arg4: memref<2x32xf32, #tpu.memory_space<vmem>>, %arg5: memref<1x32xf32, #tpu.memory_space<vmem>>, %arg6: memref<32x16xf32, #tpu.memory_space<vmem>>, %arg7: memref<1x16xf32, #tpu.memory_space<vmem>>, %arg8: memref<64x16xf32, #tpu.memory_space<vmem>>, %arg9: memref<16x16xf32, #tpu.memory_space<vmem>>, %arg10: memref<1x16xf32, #tpu.memory_space<vmem>>, %arg11: memref<2x16xf32, #tpu.memory_space<vmem>>) attributes {dimension_semantics = [], scalar_prefetch = 0 : i64, scratch_operands = 0 : i64, tpu.core_type = #tpu.core_type<tc>} {
    %cst = arith.constant 3.906250e-03 : f32
    %0 = vector.broadcast %cst : f32 to vector<1x256xf32>
    %c0 = arith.constant 0 : index
    %c0_0 = arith.constant 0 : index
    %1 = vector.load %arg2[%c0, %c0_0] : memref<72x64xbf16, #tpu.memory_space<vmem>>, vector<72x64xbf16>
    %c0_1 = arith.constant 0 : index
    %c0_2 = arith.constant 0 : index
    %2 = vector.load %arg3[%c0_1, %c0_2] : memref<1x64xf32, #tpu.memory_space<vmem>>, vector<1x64xf32>
    %c0_3 = arith.constant 0 : index
    %c0_4 = arith.constant 0 : index
    %3 = vector.load %arg0[%c0_3, %c0_4] : memref<512x72xbf16, #tpu.memory_space<vmem>>, vector<256x72xbf16>
    %cst_5 = arith.constant dense<0.000000e+00> : vector<256x64xf32>
    %4 = tpu.matmul %3, %1, %cst_5 {dimension_numbers = #tpu.dot_dimension_numbers<[1], [0], [0], [1], [0, 0, 1, 1], [], []>} : vector<256x72xbf16>, vector<72x64xbf16>, vector<256x64xf32> -> vector<256x64xf32>
    %5 = vector.broadcast %2 : vector<1x64xf32> to vector<256x64xf32>
    %6 = arith.addf %4, %5 : vector<256x64xf32>
    %7 = arith.negf %6 : vector<256x64xf32>
    %8 = math.exp %7 : vector<256x64xf32>
    %cst_6 = arith.constant 1.000000e+00 : f32
    %9 = vector.broadcast %cst_6 : f32 to vector<256x64xf32>
    %10 = arith.addf %9, %8 : vector<256x64xf32>
    %11 = arith.divf %9, %10 : vector<256x64xf32>
    %12 = arith.mulf %6, %11 : vector<256x64xf32>
    %cst_7 = arith.constant dense<0.000000e+00> : vector<1x64xf32>
    %13 = tpu.matmul %0, %12, %cst_7 {dimension_numbers = #tpu.dot_dimension_numbers<[1], [0], [0], [1], [0, 0, 1, 1], [], []>} : vector<1x256xf32>, vector<256x64xf32>, vector<1x64xf32> -> vector<1x64xf32>
    %c256 = arith.constant 256 : index
    %c0_8 = arith.constant 0 : index
    %14 = vector.load %arg0[%c256, %c0_8] : memref<512x72xbf16, #tpu.memory_space<vmem>>, vector<256x72xbf16>
    %cst_9 = arith.constant dense<0.000000e+00> : vector<256x64xf32>
    %15 = tpu.matmul %14, %1, %cst_9 {dimension_numbers = #tpu.dot_dimension_numbers<[1], [0], [0], [1], [0, 0, 1, 1], [], []>} : vector<256x72xbf16>, vector<72x64xbf16>, vector<256x64xf32> -> vector<256x64xf32>
    %16 = vector.broadcast %2 : vector<1x64xf32> to vector<256x64xf32>
    %17 = arith.addf %15, %16 : vector<256x64xf32>
    %18 = arith.negf %17 : vector<256x64xf32>
    %19 = math.exp %18 : vector<256x64xf32>
    %cst_10 = arith.constant 1.000000e+00 : f32
    %20 = vector.broadcast %cst_10 : f32 to vector<256x64xf32>
    %21 = arith.addf %20, %19 : vector<256x64xf32>
    %22 = arith.divf %20, %21 : vector<256x64xf32>
    %23 = arith.mulf %17, %22 : vector<256x64xf32>
    %cst_11 = arith.constant dense<0.000000e+00> : vector<1x64xf32>
    %24 = tpu.matmul %0, %23, %cst_11 {dimension_numbers = #tpu.dot_dimension_numbers<[1], [0], [0], [1], [0, 0, 1, 1], [], []>} : vector<1x256xf32>, vector<256x64xf32>, vector<1x64xf32> -> vector<1x64xf32>
    %25 = tpu.concatenate %13, %24 in 0 : vector<1x64xf32>, vector<1x64xf32> -> vector<2x64xf32>
    %c0_12 = arith.constant 0 : index
    %c0_13 = arith.constant 0 : index
    %26 = vector.load %arg1[%c0_12, %c0_13] : memref<2x2xf32, #tpu.memory_space<vmem>>, vector<2x1xf32>
    %c0_14 = arith.constant 0 : index
    %c0_15 = arith.constant 0 : index
    %27 = vector.load %arg4[%c0_14, %c0_15] : memref<2x32xf32, #tpu.memory_space<vmem>>, vector<1x32xf32>
    %28 = vector.broadcast %26 : vector<2x1xf32> to vector<2x32xf32>
    %29 = vector.broadcast %27 : vector<1x32xf32> to vector<2x32xf32>
    %30 = arith.mulf %28, %29 : vector<2x32xf32>
    %c0_16 = arith.constant 0 : index
    %c1 = arith.constant 1 : index
    %31 = vector.load %arg1[%c0_16, %c1] : memref<2x2xf32, #tpu.memory_space<vmem>>, vector<2x1xf32>
    %c1_17 = arith.constant 1 : index
    %c0_18 = arith.constant 0 : index
    %32 = vector.load %arg4[%c1_17, %c0_18] : memref<2x32xf32, #tpu.memory_space<vmem>>, vector<1x32xf32>
    %33 = vector.broadcast %31 : vector<2x1xf32> to vector<2x32xf32>
    %34 = vector.broadcast %32 : vector<1x32xf32> to vector<2x32xf32>
    %35 = arith.mulf %33, %34 : vector<2x32xf32>
    %36 = arith.addf %30, %35 : vector<2x32xf32>
    %c0_19 = arith.constant 0 : index
    %c0_20 = arith.constant 0 : index
    %37 = vector.load %arg5[%c0_19, %c0_20] : memref<1x32xf32, #tpu.memory_space<vmem>>, vector<1x32xf32>
    %38 = vector.broadcast %37 : vector<1x32xf32> to vector<2x32xf32>
    %39 = arith.addf %36, %38 : vector<2x32xf32>
    %40 = arith.negf %39 : vector<2x32xf32>
    %41 = math.exp %40 : vector<2x32xf32>
    %cst_21 = arith.constant 1.000000e+00 : f32
    %42 = vector.broadcast %cst_21 : f32 to vector<2x32xf32>
    %43 = arith.addf %42, %41 : vector<2x32xf32>
    %44 = arith.divf %42, %43 : vector<2x32xf32>
    %45 = arith.mulf %39, %44 : vector<2x32xf32>
    %c0_22 = arith.constant 0 : index
    %c0_23 = arith.constant 0 : index
    %46 = vector.load %arg6[%c0_22, %c0_23] : memref<32x16xf32, #tpu.memory_space<vmem>>, vector<32x16xf32>
    %cst_24 = arith.constant dense<0.000000e+00> : vector<2x16xf32>
    %47 = tpu.matmul %45, %46, %cst_24 {dimension_numbers = #tpu.dot_dimension_numbers<[1], [0], [0], [1], [0, 0, 1, 1], [], []>} : vector<2x32xf32>, vector<32x16xf32>, vector<2x16xf32> -> vector<2x16xf32>
    %c0_25 = arith.constant 0 : index
    %c0_26 = arith.constant 0 : index
    %48 = vector.load %arg7[%c0_25, %c0_26] : memref<1x16xf32, #tpu.memory_space<vmem>>, vector<1x16xf32>
    %49 = vector.broadcast %48 : vector<1x16xf32> to vector<2x16xf32>
    %50 = arith.addf %47, %49 : vector<2x16xf32>
    %51 = arith.negf %50 : vector<2x16xf32>
    %52 = math.exp %51 : vector<2x16xf32>
    %cst_27 = arith.constant 1.000000e+00 : f32
    %53 = vector.broadcast %cst_27 : f32 to vector<2x16xf32>
    %54 = arith.addf %53, %52 : vector<2x16xf32>
    %55 = arith.divf %53, %54 : vector<2x16xf32>
    %56 = arith.mulf %50, %55 : vector<2x16xf32>
    %c0_28 = arith.constant 0 : index
    %c0_29 = arith.constant 0 : index
    %57 = vector.load %arg8[%c0_28, %c0_29] : memref<64x16xf32, #tpu.memory_space<vmem>>, vector<64x16xf32>
    %cst_30 = arith.constant dense<0.000000e+00> : vector<2x16xf32>
    %58 = tpu.matmul %25, %57, %cst_30 {dimension_numbers = #tpu.dot_dimension_numbers<[1], [0], [0], [1], [0, 0, 1, 1], [], []>} : vector<2x64xf32>, vector<64x16xf32>, vector<2x16xf32> -> vector<2x16xf32>
    %c0_31 = arith.constant 0 : index
    %c0_32 = arith.constant 0 : index
    %59 = vector.load %arg9[%c0_31, %c0_32] : memref<16x16xf32, #tpu.memory_space<vmem>>, vector<16x16xf32>
    %cst_33 = arith.constant dense<0.000000e+00> : vector<2x16xf32>
    %60 = tpu.matmul %56, %59, %cst_33 {dimension_numbers = #tpu.dot_dimension_numbers<[1], [0], [0], [1], [0, 0, 1, 1], [], []>} : vector<2x16xf32>, vector<16x16xf32>, vector<2x16xf32> -> vector<2x16xf32>
    %61 = arith.addf %58, %60 : vector<2x16xf32>
    %c0_34 = arith.constant 0 : index
    %c0_35 = arith.constant 0 : index
    %62 = vector.load %arg10[%c0_34, %c0_35] : memref<1x16xf32, #tpu.memory_space<vmem>>, vector<1x16xf32>
    %63 = vector.broadcast %62 : vector<1x16xf32> to vector<2x16xf32>
    %64 = arith.addf %61, %63 : vector<2x16xf32>
    %c0_36 = arith.constant 0 : index
    %c0_37 = arith.constant 0 : index
    %65 = vector.load %arg11[%c0_36, %c0_37] : memref<2x16xf32, #tpu.memory_space<vmem>>, vector<2x16xf32>
    tpu.vector_store %arg11[%c0_36, %c0_37], %64 {strides = array<i32>} : memref<2x16xf32, #tpu.memory_space<vmem>>, vector<2x16xf32>,
    return
  }
}

</mosaic_0001>

<bundles_post_ra>
// kernel: mmc_net_forward.1
= control target key start
LH: loop header
LB: loop body
LE: loop exit
PB: predicated region body
PF: predicated region fallthrough
CT: control target
= control target key end

     0   :  { %vm240_vm0 = vcmask 1043456   ;;  %vm191_vm1 = vcmask 588800   ;;  %s5195_s2 = inlined_call_operand.vmem [shape: bf16[72,64], index: 2, kind: input, shape index: {}]   ;;  %s5196_s3 = inlined_call_operand.vmem [shape: f32[1,64], index: 3, kind: input, shape index: {}]   ;;  %s5197_s0 = inlined_call_operand.vmem [shape: bf16[512,72], index: 0, kind: input, shape index: {}]   ;;  %s5198_s1 = inlined_call_operand.vmem [shape: f32[2,2], index: 1, kind: input, shape index: {}]   ;;  %s5199_s4 = inlined_call_operand.vmem [shape: f32[2,32], index: 4, kind: input, shape index: {}]   ;;  %s5200_s5 = inlined_call_operand.vmem [shape: f32[1,32], index: 5, kind: input, shape index: {}]   ;;  %s5201_s6 = inlined_call_operand.vmem [shape: f32[32,16], index: 6, kind: input, shape index: {}]   ;;  %s5202_s8 = inlined_call_operand.vmem [shape: f32[64,16], index: 8, kind: input, shape index: {}]   ;;  %s5203_s7 = inlined_call_operand.vmem [shape: f32[1,16], index: 7, kind: input, shape index: {}]   ;;  %s5204_s10 = inlined_call_operand.vmem [shape: f32[1,16], index: 10, kind: input, shape index: {}]   ;;  %s5205_s9 = inlined_call_operand.vmem [shape: f32[16,16], index: 9, kind: input, shape index: {}]   ;;  %s5206_s11 = inlined_call_operand.vmem [shape: f32[2,16], index: 11, kind: output, shape index: {}]  }
   0x1   :  { %v47_v0 = vld [vmem:[%s5195_s2 + $0x20] sm:$0xf]  ;;  %v2358_v4 = vld [vmem:[%s5195_s2 + $0x18] sm:$0xff]  ;;  %v2357_v5 = vld [vmem:[%s5195_s2 + $0x10] sm:$0xff] }
   0x2   :  { %v181_v1 = vunpack.c.l.b16 %v47_v0  ;;  %v2356_v6 = vld [vmem:[%s5195_s2 + $0x8] sm:$0xff]  ;;  %v2355_v7 = vld [vmem:[%s5195_s2] sm:$0xff]  ;;  %v2369_v9 = vld [vmem:[%s5197_s0 + $0x50] sm:$0xff] }
   0x3   :  { %v2359_v8 = vld [vmem:[%s5197_s0] sm:$0xff]  ;;  %v2360_v10 = vld [vmem:[%s5197_s0 + $0x8] sm:$0xff]  ;;  %v2370_v11 = vld [vmem:[%s5197_s0 + $0x58] sm:$0xff] }
   0x4   :  { %v186_v2 = vpack.c.b16 %v181_v1, %v181_v1  ;;  %v2361_v12 = vld [vmem:[%s5197_s0 + $0x10] sm:$0xff]  ;;  %v2371_v13 = vld [vmem:[%s5197_s0 + $0x60] sm:$0xff]  ;;  %v2362_v14 = vld [vmem:[%s5197_s0 + $0x18] sm:$0xff] }
   0x5   :  { %v2372_v15 = vld [vmem:[%s5197_s0 + $0x68] sm:$0xff]  ;;  %v2363_v16 = vld [vmem:[%s5197_s0 + $0x20] sm:$0xff]  ;;  %v2373_v17 = vld [vmem:[%s5197_s0 + $0x70] sm:$0xff] }
   0x6   :  { %v2748_v3 = vsel %vm240_vm0, %v186_v2, 0  ;;  %v2381_v18 = vld [vmem:[%s5197_s0 + $0xb0] sm:$0xff]  ;;  %v2364_v19 = vld [vmem:[%s5197_s0 + $0x28] sm:$0xff]  ;;  %v2374_v20 = vld [vmem:[%s5197_s0 + $0x78] sm:$0xff] }
   0x7   :  { %5244 = vst [vmem:[#allocation2_spill] sm:$0xff] %v2748_v3  ;;  %247 = vmatpush.bf16.msra.mxu0 %v2748_v3  ;;  %2391 = vmatpush.bf16.msra.mxu2 %v2748_v3  ;;  %v2382_v21 = vld [vmem:[%s5197_s0 + $0xb8] sm:$0xff]  ;;  %v2365_v22 = vld [vmem:[%s5197_s0 + $0x30] sm:$0xff]  ;;  %v2383_v23 = vld [vmem:[%s5197_s0 + $0xc0] sm:$0xff] }
   0x8   :  { %2396 = vmatpush.bf16.msra.mxu3 %v2748_v3  ;;  %v2366_v24 = vld [vmem:[%s5197_s0 + $0x38] sm:$0xff]  ;;  %v2384_v25 = vld [vmem:[%s5197_s0 + $0xc8] sm:$0xff]  ;;  %v2367_v26 = vld [vmem:[%s5197_s0 + $0x40] sm:$0xff] }
   0x9   :  { %v2385_v30 = vld [vmem:[%s5197_s0 + $0xd0] sm:$0xff]  ;;  %v2368_v31 = vld [vmem:[%s5197_s0 + $0x48] sm:$0xff]  ;;  %v2853_v34 = vld [vmem:[%s5196_s3] ss:$0 sm:$0xff] }
   0xa   :  { %v2386_v39 = vld [vmem:[%s5197_s0 + $0xd8] sm:$0xff]  ;;  %v2387_v54 = vld [vmem:[%s5197_s0 + $0xe0] sm:$0xff] }
   0xb   :  { %248 = vmatpush.bf16.msra.mxu0 %v2358_v4  ;;  %2392 = vmatpush.bf16.msra.mxu2 %v2358_v4 }
   0xc   :  { %2397 = vmatpush.bf16.msra.mxu3 %v2358_v4 }
   0xf   :  { %249 = vmatpush.bf16.msra.mxu0 %v2357_v5  ;;  %2393 = vmatpush.bf16.msra.mxu2 %v2357_v5 }
  0x10   :  { %2398 = vmatpush.bf16.msra.mxu3 %v2357_v5 }
  0x13   :  { %250 = vmatpush.bf16.msra.mxu0 %v2356_v6  ;;  %2394 = vmatpush.bf16.msra.mxu2 %v2356_v6 }
  0x14   :  { %2399 = vmatpush.bf16.msra.mxu3 %v2356_v6 }
  0x17   :  { %251 = vmatpush.bf16.msra.mxu0 %v2355_v7  ;;  %2395 = vmatpush.bf16.msra.mxu2 %v2355_v7 }
  0x18   :  { %2400 = vmatpush.bf16.msra.mxu3 %v2355_v7 }
  0x1a   :  { %2190 = vmatmul.msk.bf16.vlgmr.msra.gmra.mxu0 %vm191_vm1, %v2359_v8  ;;  %2200 = vmatmul.msk.bf16.vlgmr.msra.gmra.mxu2 %vm191_vm1, %v2369_v9 }
  0x1b   :  { %2308 = vmatmul.msk.bf16.vlgmr.msra.gmra.mxu3 %vm191_vm1, %v2381_v18 }
  0x2a   :  { %2191 = vmatmul.msk.bf16.gmra.mxu0 %vm191_vm1, %v2360_v10  ;;  %2201 = vmatmul.msk.bf16.gmra.mxu2 %vm191_vm1, %v2370_v11 }
  0x2b   :  { %2309 = vmatmul.msk.bf16.gmra.mxu3 %vm191_vm1, %v2382_v21 }
  0x3a   :  { %2192 = vmatmul.msk.bf16.gmra.mxu0 %vm191_vm1, %v2361_v12  ;;  %2202 = vmatmul.msk.bf16.gmra.mxu2 %vm191_vm1, %v2371_v13  ;;  %v2388_v12 = vld [vmem:[%s5197_s0 + $0xe8] sm:$0xff] }
  0x3b   :  { %2310 = vmatmul.msk.bf16.gmra.mxu3 %vm191_vm1, %v2383_v23 }
  0x4a   :  { %2193 = vmatmul.msk.bf16.gmra.mxu0 %vm191_vm1, %v2362_v14  ;;  %2203 = vmatmul.msk.bf16.gmra.mxu2 %vm191_vm1, %v2372_v15 }
  0x4b   :  { %2311 = vmatmul.msk.bf16.gmra.mxu3 %vm191_vm1, %v2384_v25 }
  0x5a   :  { %2194 = vmatmul.msk.bf16.gmra.mxu0 %vm191_vm1, %v2363_v16  ;;  %2204 = vmatmul.msk.bf16.gmra.mxu2 %vm191_vm1, %v2373_v17 }
  0x5b   :  { %2312 = vmatmul.msk.bf16.gmra.mxu3 %vm191_vm1, %v2385_v30 }
  0x6a   :  { %2195 = vmatmul.msk.bf16.gmra.mxu0 %vm191_vm1, %v2364_v19  ;;  %2205 = vmatmul.msk.bf16.gmra.mxu2 %vm191_vm1, %v2374_v20 }
  0x6b   :  { %2313 = vmatmul.msk.bf16.gmra.mxu3 %vm191_vm1, %v2386_v39 }
  0x7a   :  { %2196 = vmatmul.msk.bf16.gmra.mxu0 %vm191_vm1, %v2365_v22 }
  0x7b   :  { %2314 = vmatmul.msk.bf16.gmra.mxu3 %vm191_vm1, %v2387_v54 }
  0x8a   :  { %2197 = vmatmul.msk.bf16.gmra.mxu0 %vm191_vm1, %v2366_v24 }
  0x8b   :  { %2315 = vmatmul.msk.bf16.gmra.mxu3 %vm191_vm1, %v2388_v12 }
  0x97   :  { %v253_v27 = vpop.f32.mrf.mxu0 }
  0x98   :  { %v2857_v35 = vadd.f32 %v2853_v34, %v253_v27 }
  0x9a   :  { %2198 = vmatmul.msk.bf16.gmra.mxu0 %vm191_vm1, %v2367_v26  ;;  %v2206_v38 = vmul.f32 -1.442695, %v2857_v35 }
  0x9c   :  { %2412 = vpow2.f32 %v2206_v38 }
  0x9d   :  { %v303_v29 = vpop.f32.mrf.mxu2 }
  0x9e   :  { %v2908_v1 = vadd.f32 %v2853_v34, %v303_v29 }
  0x9f   :  { %v255_v28 = vpop.f32.mrf.mxu0 }
  0xa0   :  { %v2866_v40 = vadd.f32 %v2853_v34, %v255_v28  ;;  %5245 = vst [vmem:[#allocation3_spill] sm:$0xff] %v2908_v1  ;;  %v2226_v10 = vmul.f32 -1.442695, %v2908_v1 }
  0xa2   :  { %v2207_v43 = vmul.f32 -1.442695, %v2866_v40  ;;  %v2413_v45 = vpop.eup %2412 }
  0xa3   :  { %v2876_v47 = vadd.f32 1.0, %v2413_v45 }
  0xa4   :  { %2414 = vpow2.f32 %v2207_v43 }
  0xa5   :  { %v2848_v33 = vpop.f32.mrf.mxu2  ;;  %v470_v21 = vand.u32 2147483647, %v2876_v47  ;;  %v472_v22 = vand.u32 2147483648, %v2876_v47  ;;  %vm466_vm3 = vweird.f32 %v2876_v47 }
  0xa6   :  { %v2949_v27 = vadd.f32 %v2853_v34, %v2848_v33 }
  0xa7   :  { %v258_v32 = vpop.f32.mrf.mxu0  ;;  %vm2967_vm5 = vcmp.eq.f32.partialorder %v470_v21, 8.507059e+37  ;;  %v473_v38 = vor.u32 1.1754944e-38, %v472_v22 }
  0xa8   :  { %v2873_v44 = vadd.f32 %v2853_v34, %v258_v32  ;;  %5247 = vst [vmem:[#allocation5_spill] sm:$0xff] %v2949_v27 }
  0xaa   :  { %2199 = vmatmul.msk.bf16.gmra.mxu0 %vm191_vm1, %v2368_v31  ;;  %v2208_v46 = vmul.f32 -1.442695, %v2873_v44  ;;  %v2415_v51 = vpop.eup %2414 }
  0xab   :  { %v2892_v55 = vadd.f32 1.0, %v2415_v51 }
  0xac   :  { %2416 = vpow2.f32 %v2208_v46  ;;  %v2227_v46 = vmul.f32 -1.442695, %v2949_v27 }
  0xad   :  { %v2859_v37 = vpop.f32.mrf.mxu2  ;;  %2418 = vrcp.f32 %v2876_v47  ;;  %v487_v28 = vand.u32 2147483648, %v2892_v55  ;;  %v485_v31 = vand.u32 2147483647, %v2892_v55  ;;  %vm481_vm6 = vweird.f32 %v2892_v55 }
  0xae   :  { %v2956_v30 = vadd.f32 %v2853_v34, %v2859_v37 }
  0xaf   :  { %v260_v36 = vpop.f32.mrf.mxu0  ;;  %vm2989_vm8 = vcmp.eq.f32.partialorder %v485_v31, 8.507059e+37 }
  0xb0   :  { %v2879_v48 = vadd.f32 %v2853_v34, %v260_v36  ;;  %5248 = vst [vmem:[#allocation6_spill] sm:$0xff] %v2956_v30 }
  0xb2   :  { %v2209_v52 = vmul.f32 -1.442695, %v2879_v48  ;;  %v2417_v59 = vpop.eup %2416 }
  0xb3   :  { %v2897_v60 = vpop.eup %2418  ;;  %v2900_v61 = vadd.f32 1.0, %v2417_v59 }
  0xb4   :  { %2420 = vpow2.f32 %v2209_v52  ;;  %v462_v63 = vmul.f32 %v2897_v60, %v2876_v47  ;;  %vm467_vm2 = vweird.f32 %v2897_v60  ;;  %v2228_v52 = vmul.f32 -1.442695, %v2956_v30 }
  0xb5   :  { %v2869_v42 = vpop.f32.mrf.mxu2  ;;  %2422 = vrcp.f32 %v2892_v55  ;;  %vm2963_vm4 = vmor %vm466_vm3, %vm467_vm2  ;;  %vm496_vm9 = vweird.f32 %v2900_v61 }
  0xb6   :  { %v463_v8 = vsub.f32 1.0, %v462_v63  ;;  %v3008_v12 = vadd.f32 %v2853_v34, %v2869_v42 }
  0xb7   :  { %v263_v41 = vpop.f32.mrf.mxu0 }
  0xb8   :  { %v2886_v53 = vadd.f32 %v2853_v34, %v263_v41  ;;  %v464_v15 = vmul.f32 %v2897_v60, %v463_v8  ;;  %5256 = vst [vmem:[#allocation8_spill] sm:$0xff] %v3008_v12 }
  0xba   :  { %v2210_v56 = vmul.f32 -1.442695, %v2886_v53  ;;  %v2421_v0 = vpop.eup %2420  ;;  %v465_v25 = vadd.f32 %v2897_v60, %v464_v15 }
  0xbb   :  { %v2914_v6 = vpop.eup %2422  ;;  %v2916_v7 = vadd.f32 1.0, %v2421_v0  ;;  %v502_v0 = vand.u32 2147483648, %v2900_v61 }
  0xbc   :  { %2424 = vpow2.f32 %v2210_v56  ;;  %v477_v14 = vmul.f32 %v2914_v6, %v2892_v55  ;;  %v469_v45 = vsel %vm2963_vm4, %v2897_v60, %v465_v25  ;;  %v500_v56 = vand.u32 2147483647, %v2900_v61  ;;  %v2389_v25 = vld [vmem:[%s5197_s0 + $0xf0] sm:$0xff] }
  0xbd   :  { %v2881_v50 = vpop.f32.mrf.mxu2  ;;  %2426 = vrcp.f32 %v2900_v61  ;;  %vm482_vm7 = vweird.f32 %v2914_v6  ;;  %v503_v42 = vor.u32 1.1754944e-38, %v502_v0  ;;  %2316 = vmatmul.msk.bf16.gmra.mxu3 %vm191_vm1, %v2389_v25  ;;  %vm511_vm13 = vweird.f32 %v2916_v7 }
  0xbe   :  { %v478_v24 = vsub.f32 1.0, %v477_v14  ;;  %vm3020_vm10 = vcmp.eq.f32.partialorder %v500_v56, 8.507059e+37  ;;  %vm3028_vm11 = vmor %vm481_vm6, %vm482_vm7 }
  0xbf   :  { %v265_v49 = vpop.f32.mrf.mxu0 }
  0xc0   :  { %v2903_v62 = vadd.f32 %v2853_v34, %v265_v49  ;;  %v479_v43 = vmul.f32 %v2914_v6, %v478_v24  ;;  %v488_v49 = vor.u32 1.1754944e-38, %v487_v28 }
  0xc2   :  { %v2211_v2 = vmul.f32 -1.442695, %v2903_v62  ;;  %v2425_v9 = vpop.eup %2424 }
  0xc3   :  { %v2926_v13 = vadd.f32 1.0, %v2425_v9  ;;  %v2931_v16 = vpop.eup %2426 }
  0xc4   :  { %2428 = vpow2.f32 %v2211_v2  ;;  %v492_v23 = vmul.f32 %v2931_v16, %v2900_v61  ;;  %v474_v2 = vsel %vm2967_vm5, %v473_v38, %v469_v45  ;;  %vm497_vm12 = vweird.f32 %v2931_v16 }
  0xc5   :  { %v2895_v58 = vpop.f32.mrf.mxu2  ;;  %2430 = vrcp.f32 %v2916_v7  ;;  %v515_v38 = vand.u32 2147483647, %v2916_v7  ;;  %vm3062_vm15 = vmor %vm496_vm9, %vm497_vm12  ;;  %vm526_vm4 = vweird.f32 %v2926_v13 }
  0xc6   :  { %2432 = vpow2.f32 %v2226_v10  ;;  %v493_v41 = vsub.f32 1.0, %v492_v23  ;;  %v480_v10 = vadd.f32 %v2914_v6, %v479_v43  ;;  %v517_v43 = vand.u32 2147483648, %v2916_v7 }
  0xc7   :  { %v268_v57 = vpop.f32.mrf.mxu0  ;;  %2434 = vrcp.f32 %v2926_v13  ;;  %vm3092_vm0 = vcmp.eq.f32.partialorder %v515_v38, 8.507059e+37 }
  0xc8   :  { %v2920_v11 = vadd.f32 %v2853_v34, %v268_v57  ;;  %v494_v9 = vmul.f32 %v2931_v16, %v493_v41  ;;  %v484_v55 = vsel %vm3028_vm11, %v2914_v6, %v480_v10  ;;  %v532_v10 = vand.u32 2147483648, %v2926_v13 }
  0xca   :  { %5246 = vst [vmem:[#allocation4_spill] sm:$0xff] %v2920_v11  ;;  %v2212_v17 = vmul.f32 -1.442695, %v2920_v11  ;;  %v2429_v26 = vpop.eup %2428  ;;  %v533_v38 = vor.u32 1.1754944e-38, %v532_v10 }
  0xcb   :  { %v2952_v29 = vpop.eup %2430  ;;  %v2971_v37 = vadd.f32 1.0, %v2429_v26  ;;  %v495_v26 = vadd.f32 %v2931_v16, %v494_v9 }
  0xcc   :  { %2436 = vpow2.f32 %v2212_v17  ;;  %v2433_v39 = vpop.eup %2432  ;;  %v507_v47 = vmul.f32 %v2952_v29, %v2916_v7  ;;  %vm512_vm14 = vweird.f32 %v2952_v29 }
  0xcd   :  { %v2912_v5 = vpop.f32.mrf.mxu2  ;;  %v2981_v51 = vpop.eup %2434  ;;  %v2993_v59 = vadd.f32 1.0, %v2433_v39  ;;  %vm3105_vm2 = vmor %vm511_vm13, %vm512_vm14  ;;  %vm541_vm7 = vweird.f32 %v2971_v37 }
  0xce   :  { %v522_v14 = vmul.f32 %v2981_v51, %v2926_v13  ;;  %v508_v15 = vsub.f32 1.0, %v507_v47  ;;  %vm527_vm3 = vweird.f32 %v2981_v51 }
  0xcf   :  { %v270_v4 = vpop.f32.mrf.mxu0  ;;  %5255 = vst [vmem:[#allocation7_spill] sm:$0xff] %v2993_v59  ;;  %vm3137_vm6 = vmor %vm526_vm4, %vm527_vm3 }
  0xd0   :  { %v2936_v18 = vadd.f32 %v2853_v34, %v270_v4  ;;  %v523_v31 = vsub.f32 1.0, %v522_v14 }
  0xd2   :  { %v2213_v32 = vmul.f32 -1.442695, %v2936_v18  ;;  %v2437_v4 = vpop.eup %2436  ;;  %v524_v0 = vmul.f32 %v2981_v51, %v523_v31 }
  0xd3   :  { %v3018_v21 = vadd.f32 1.0, %v2437_v4  ;;  %v530_v4 = vand.u32 2147483647, %v2926_v13  ;;  %v545_v13 = vand.u32 2147483647, %v2971_v37 }
  0xd4   :  { %2438 = vpow2.f32 %v2213_v32  ;;  %v509_v32 = vmul.f32 %v2952_v29, %v508_v15 }
  0xd5   :  { %v2938_v20 = vpop.f32.mrf.mxu2  ;;  %2440 = vrcp.f32 %v2971_v37  ;;  %vm3121_vm5 = vcmp.eq.f32.partialorder %v530_v4, 8.507059e+37  ;;  %v547_v4 = vand.u32 2147483648, %v2971_v37  ;;  %vm3174_vm9 = vcmp.eq.f32.partialorder %v545_v13, 8.507059e+37 }
  0xd6   :  { %2442 = vpow2.f32 %v2227_v46  ;;  %v489_v46 = vsel %vm2989_vm8, %v488_v49, %v484_v55  ;;  %v510_v57 = vadd.f32 %v2952_v29, %v509_v32  ;;  %v525_v55 = vadd.f32 %v2981_v51, %v524_v0 }
  0xd7   :  { %v273_v19 = vpop.f32.mrf.mxu0  ;;  %2444 = vpow2.f32 %v2228_v52  ;;  %v3097_v15 = vmul.f32 %v489_v46, %v2866_v40  ;;  %v3165_v14 = vadd.f32 %v2853_v34, %v2938_v20  ;;  %v548_v22 = vor.u32 1.1754944e-38, %v547_v4 }
  0xd8   :  { %v2985_v54 = vadd.f32 %v2853_v34, %v273_v19  ;;  %v3015_v19 = vadd.f32 %v2853_v34, %v2881_v50  ;;  %v3033_v50 = vmul.f32 %v474_v2, %v2857_v35  ;;  %2446 = vrcp.f32 %v2993_v59 }
  0xd9   :  { %v2229_v35 = vmul.f32 -1.442695, %v3008_v12  ;;  %v3084_v2 = vadd.f32 %v2853_v34, %v2895_v58  ;;  %5271 = vst [vmem:[#allocation15_spill] sm:$0xff] %v3097_v15 }
  0xda   :  { %v2214_v17 = vmul.f32 -1.442695, %v2985_v54  ;;  %5257 = vst [vmem:[#allocation9_spill] sm:$0xff] %v3015_v19  ;;  %v2439_v28 = vpop.eup %2438  ;;  %v2230_v36 = vmul.f32 -1.442695, %v3015_v19 }
  0xdb   :  { %5262 = vst [vmem:[#allocation10_spill] sm:$0xff] %v3033_v50  ;;  %v3047_v33 = vpop.eup %2440  ;;  %v3068_v52 = vadd.f32 1.0, %v2439_v28  ;;  %v514_v28 = vsel %vm3105_vm2, %v2952_v29, %v510_v57  ;;  %v3157_v57 = vadd.f32 %v2853_v34, %v2912_v5 }
  0xdc   :  { %2448 = vpow2.f32 %v2214_v17  ;;  %v2443_v6 = vpop.eup %2442  ;;  %v537_v61 = vmul.f32 %v3047_v33, %v2971_v37  ;;  %5266 = vst [vmem:[#allocation12_spill] sm:$0xff] %v3084_v2  ;;  %vm542_vm8 = vweird.f32 %v3047_v33 }
  0xdd   :  { %v2995_v63 = vpop.f32.mrf.mxu2  ;;  %2450 = vrcp.f32 %v3018_v21  ;;  %v2445_v47 = vpop.eup %2444  ;;  %v3080_v49 = vadd.f32 1.0, %v2443_v6  ;;  %vm3214_vm12 = vmor %vm541_vm7, %vm542_vm8  ;;  %vm571_vm14 = vweird.f32 %v3068_v52 }
  0xde   :  { %v3087_v9 = vpop.eup %2446  ;;  %v538_v40 = vsub.f32 1.0, %v537_v61  ;;  %v3229_v37 = vadd.f32 %v2853_v34, %v2995_v63 }
  0xdf   :  { %v275_v60 = vpop.f32.mrf.mxu0  ;;  %5265 = vst [vmem:[#allocation11_spill] sm:$0xff] %v3080_v49 }
  0xe0   :  { %v3002_v8 = vadd.f32 %v2853_v34, %v275_v60  ;;  %v499_v60 = vsel %vm3062_vm15, %v2931_v16, %v495_v26  ;;  %5267 = vst [vmem:[#allocation13_spill] sm:$0xff] %v3087_v9  ;;  %v3089_v16 = vadd.f32 1.0, %v2445_v47  ;;  %v539_v47 = vmul.f32 %v3047_v33, %v538_v40 }
  0xe1   :  { %v504_v25 = vsel %vm3020_vm10, %v503_v42, %v499_v60  ;;  %v529_v60 = vsel %vm3137_vm6, %v2981_v51, %v525_v55  ;;  %v3167_v51 = vpop.f32.mrf.mxu3  ;;  %vm556_vm10 = vweird.f32 %v3018_v21 }
  0xe2   :  { %v2215_v24 = vmul.f32 -1.442695, %v3002_v8  ;;  %5268 = vst [vmem:[#allocation14_spill] sm:$0xff] %v3089_v16  ;;  %v2449_v17 = vpop.eup %2448  ;;  %v3129_v29 = vmul.f32 %v504_v25, %v2873_v44  ;;  %v534_v23 = vsel %vm3121_vm5, %v533_v38, %v529_v60  ;;  %v540_v55 = vadd.f32 %v3047_v33, %v539_v47 }
  0xe3   :  { %v3111_v26 = vpop.eup %2450  ;;  %v3126_v31 = vadd.f32 1.0, %v2449_v17  ;;  %v3200_v13 = vmul.f32 %v534_v23, %v2886_v53 }
  0xe4   :  { %2452 = vpow2.f32 %v2215_v24  ;;  %v518_v24 = vor.u32 1.1754944e-38, %v517_v43  ;;  %5276 = vst [vmem:[#allocation16_spill] sm:$0xff] %v3129_v29  ;;  %v552_v44 = vmul.f32 %v3111_v26, %v3018_v21  ;;  %vm557_vm11 = vweird.f32 %v3111_v26 }
  0xe5   :  { %v3054_v41 = vpop.f32.mrf.mxu2  ;;  %2454 = vpow2.f32 %v2229_v35  ;;  %v2231_v35 = vmul.f32 -1.442695, %v3084_v2  ;;  %5285 = vst [vmem:[#allocation21_spill] sm:$0xff] %v3200_v13  ;;  %v544_v23 = vsel %vm3214_vm12, %v3047_v33, %v540_v55  ;;  %v575_v33 = vand.u32 2147483647, %v3068_v52 }
  0xe6   :  { %2456 = vpow2.f32 %v2230_v36  ;;  %v519_v45 = vsel %vm3092_vm0, %v518_v24, %v514_v28  ;;  %v553_v40 = vsub.f32 1.0, %v552_v44  ;;  %v2390_v28 = vld [vmem:[%s5197_s0 + $0xf8] sm:$0xff]  ;;  %vm3280_vm0 = vmor %vm556_vm10, %vm557_vm11  ;;  %v590_v59 = vand.u32 2147483647, %v3126_v31 }
  0xe7   :  { %v278_v39 = vpop.f32.mrf.mxu0  ;;  %2458 = vrcp.f32 %v3068_v52  ;;  %v3181_v20 = vmul.f32 %v519_v45, %v2879_v48  ;;  %v2232_v48 = vmul.f32 -1.442695, %v3157_v57  ;;  %2317 = vmatmul.msk.bf16.gmra.mxu3 %vm191_vm1, %v2390_v28  ;;  %vm3272_vm15 = vcmp.eq.f32.partialorder %v575_v33, 8.507059e+37 }
  0xe8   :  { %v3071_v56 = vadd.f32 %v2853_v34, %v278_v39  ;;  %2460 = vrcp.f32 %v3080_v49  ;;  %vm586_vm3 = vweird.f32 %v3126_v31  ;;  %vm3331_vm5 = vcmp.eq.f32.partialorder %v590_v59, 8.507059e+37 }
  0xe9   :  { %2462 = vrcp.f32 %v3089_v16  ;;  %5283 = vst [vmem:[#allocation19_spill] sm:$0xff] %v3181_v20 }
  0xea   :  { %v2216_v58 = vmul.f32 -1.442695, %v3071_v56  ;;  %v2453_v7 = vpop.eup %2452 }
  0xeb   :  { %v2455_v42 = vpop.eup %2454  ;;  %v3143_v46 = vadd.f32 1.0, %v2453_v7 }
  0xec   :  { %v2457_v6 = vpop.eup %2456  ;;  %2464 = vpow2.f32 %v2216_v58  ;;  %v3153_v0 = vadd.f32 1.0, %v2455_v42 }
  0xed   :  { %v328_v36 = vpop.f32.mrf.mxu2  ;;  %v3151_v61 = vpop.eup %2458  ;;  %2466 = vpow2.f32 %v2231_v35  ;;  %v3161_v10 = vadd.f32 1.0, %v2457_v6  ;;  %v560_v35 = vand.u32 2147483647, %v3018_v21  ;;  %v562_v6 = vand.u32 2147483648, %v3018_v21 }
  0xee   :  { %5279 = vst [vmem:[#allocation17_spill] sm:$0xff] %v3153_v0  ;;  %2468 = vrcp.f32 %v3126_v31  ;;  %v3170_v17 = vpop.eup %2460  ;;  %v567_v25 = vmul.f32 %v3151_v61, %v3068_v52  ;;  %vm572_vm2 = vweird.f32 %v3151_v61  ;;  %v605_v59 = vand.u32 2147483647, %v3143_v46 }
  0xef   :  { %v280_v32 = vpop.f32.mrf.mxu0  ;;  %5280 = vst [vmem:[#allocation18_spill] sm:$0xff] %v3170_v17  ;;  %v3183_v24 = vpop.eup %2462  ;;  %2470 = vrcp.f32 %v3143_v46  ;;  %vm3242_vm13 = vcmp.eq.f32.partialorder %v560_v35, 8.507059e+37  ;;  %v563_v3 = vor.u32 1.1754944e-38, %v562_v6  ;;  %vm3307_vm4 = vmor %vm571_vm14, %vm572_vm2  ;;  %vm601_vm7 = vweird.f32 %v3143_v46 }
  0xf0   :  { %v3132_v39 = vadd.f32 %v2853_v34, %v280_v32  ;;  %5284 = vst [vmem:[#allocation20_spill] sm:$0xff] %v3183_v24  ;;  %2472 = vrcp.f32 %v3153_v0  ;;  %v2233_v32 = vmul.f32 -1.442695, %v3165_v14  ;;  %v568_v4 = vsub.f32 1.0, %v567_v25  ;;  %v3257_v35 = vpop.f32.mrf.mxu3 }
  0xf1   :  { %2474 = vrcp.f32 %v3161_v10  ;;  %v3238_v25 = vadd.f32 %v2853_v34, %v3054_v41  ;;  %vm3373_vm10 = vcmp.eq.f32.partialorder %v605_v59, 8.507059e+37 }
  0xf2   :  { %v2217_v58 = vmul.f32 -1.442695, %v3132_v39  ;;  %v2465_v7 = vpop.eup %2464 }
  0xf3   :  { %v2467_v43 = vpop.eup %2466  ;;  %v3220_v60 = vadd.f32 1.0, %v2465_v7  ;;  %v2235_v30 = vmul.f32 -1.442695, %v3238_v25 }
  0xf4   :  { %2476 = vpow2.f32 %v2217_v58  ;;  %v3218_v53 = vpop.eup %2468  ;;  %v554_v58 = vmul.f32 %v3111_v26, %v553_v40  ;;  %v3248_v7 = vadd.f32 1.0, %v2467_v43  ;;  %v549_v43 = vsel %vm3174_vm9, %v548_v22, %v544_v23 }
  0xf5   :  { %v330_v38 = vpop.f32.mrf.mxu2  ;;  %2478 = vpow2.f32 %v2232_v48  ;;  %v582_v48 = vmul.f32 %v3218_v53, %v3126_v31  ;;  %vm587_vm6 = vweird.f32 %v3218_v53  ;;  %v622_v13 = vand.u32 2147483648, %v3220_v60 }
  0xf6   :  { %v3207_v44 = vadd.f32 %v2853_v34, %v330_v38  ;;  %v3234_v38 = vpop.eup %2470  ;;  %2480 = vpow2.f32 %v2233_v32  ;;  %v569_v32 = vmul.f32 %v3151_v61, %v568_v4  ;;  %v555_v47 = vadd.f32 %v3111_v26, %v554_v58  ;;  %vm3367_vm9 = vmor %vm586_vm3, %vm587_vm6 }
  0xf7   :  { %v283_v42 = vpop.f32.mrf.mxu0  ;;  %v3246_v63 = vpop.eup %2472  ;;  %v597_v27 = vmul.f32 %v3234_v38, %v3143_v46  ;;  %v577_v4 = vand.u32 2147483648, %v3068_v52  ;;  %v583_v22 = vsub.f32 1.0, %v582_v48  ;;  %vm602_vm8 = vweird.f32 %v3234_v38 }
  0xf8   :  { %v3204_v45 = vadd.f32 %v2853_v34, %v283_v42  ;;  %v3232_v42 = vadd.f32 %v2853_v34, %v328_v36  ;;  %v2237_v40 = vmul.f32 -1.442695, %v3207_v44  ;;  %5290 = vst [vmem:[#allocation22_spill] sm:$0xff] %v3246_v63  ;;  %v3253_v41 = vpop.eup %2474  ;;  %v559_v33 = vsel %vm3280_vm0, %v3111_v26, %v555_v47  ;;  %vm3393_vm12 = vmor %vm601_vm7, %vm602_vm8 }
  0xf9   :  { %v598_v9 = vsub.f32 1.0, %v597_v27  ;;  %v584_v6 = vmul.f32 %v3218_v53, %v583_v22  ;;  %v607_v27 = vand.u32 2147483648, %v3143_v46  ;;  %vm616_vm11 = vweird.f32 %v3220_v60 }
  0xfa   :  { %v2218_v28 = vmul.f32 -1.442695, %v3204_v45  ;;  %v2236_v36 = vmul.f32 -1.442695, %v3232_v42  ;;  %v2477_v1 = vpop.eup %2476 }
  0xfb   :  { %v2479_v58 = vpop.eup %2478  ;;  %v3287_v15 = vadd.f32 1.0, %v2477_v1  ;;  %v592_v1 = vand.u32 2147483648, %v3126_v31  ;;  %v599_v55 = vmul.f32 %v3234_v38, %v598_v9  ;;  %v585_v9 = vadd.f32 %v3218_v53, %v584_v6 }
  0xfc   :  { %2482 = vpow2.f32 %v2218_v28  ;;  %v2234_v28 = vmul.f32 -1.442695, %v3229_v37  ;;  %v3316_v47 = vadd.f32 1.0, %v2479_v58 }
  0xfd   :  { %2484 = vrcp.f32 %v3220_v60  ;;  %v600_v20 = vadd.f32 %v3234_v38, %v599_v55  ;;  %vm631_vm0 = vweird.f32 %v3287_v15 }
  0xfe   :  { %2486 = vpow2.f32 %v2236_v36  ;;  %v2481_v36 = vpop.eup %2480 }
  0xff   :  { %v285_v50 = vpop.f32.mrf.mxu0  ;;  %2488 = vpow2.f32 %v2237_v40  ;;  %v3285_v40 = vmul.f32 %v549_v43, %v2903_v62 }
 0x100   :  { %2490 = vrcp.f32 %v3248_v7  ;;  %v3270_v5 = vadd.f32 %v2853_v34, %v285_v50  ;;  %v570_v50 = vadd.f32 %v3151_v61, %v569_v32  ;;  %v578_v32 = vor.u32 1.1754944e-38, %v577_v4 }
 0x101   :  { %5295 = vst [vmem:[#allocation23_spill] sm:$0xff] %v3285_v40  ;;  %2492 = vpow2.f32 %v2234_v28 }
 0x102   :  { %v2483_v48 = vpop.eup %2482  ;;  %v2219_v21 = vmul.f32 -1.442695, %v3270_v5  ;;  %2494 = vpow2.f32 %v2235_v30  ;;  %v3313_v30 = vsel %vm3242_vm13, %v563_v3, %v559_v33  ;;  %v574_v4 = vsel %vm3307_vm4, %v3151_v61, %v570_v50  ;;  %v3339_v50 = vpop.f32.mrf.mxu3 }
 0x103   :  { %v3296_v62 = vpop.eup %2484  ;;  %v3298_v43 = vadd.f32 1.0, %v2483_v48  ;;  %5298 = vst [vmem:[#allocation24_spill] sm:$0xff] %v3313_v30  ;;  %v593_v61 = vor.u32 1.1754944e-38, %v592_v1  ;;  %v579_v1 = vsel %vm3272_vm15, %v578_v32, %v574_v4 }
 0x104   :  { %v2487_v29 = vpop.eup %2486  ;;  %2496 = vpow2.f32 %v2219_v21  ;;  %v612_v3 = vmul.f32 %v3296_v62, %v3220_v60  ;;  %5301 = vst [vmem:[#allocation25_spill] sm:$0xff] %v3339_v50  ;;  %v3381_v55 = vmul.f32 %v579_v1, %v2936_v18  ;;  %vm617_vm13 = vweird.f32 %v3296_v62 }
 0x105   :  { %v2489_v26 = vpop.eup %2488  ;;  %2498 = vrcp.f32 %v3287_v15  ;;  %v3318_v28 = vadd.f32 1.0, %v2487_v29  ;;  %v3335_v29 = vadd.f32 1.0, %v2481_v36  ;;  %vm3461_vm4 = vmor %vm616_vm11, %vm617_vm13 }
 0x106   :  { %v3323_v52 = vpop.eup %2490  ;;  %2500 = vrcp.f32 %v3298_v43  ;;  %v3326_v22 = vadd.f32 1.0, %v2489_v26  ;;  %v613_v12 = vsub.f32 1.0, %v612_v3  ;;  %v589_v3 = vsel %vm3367_vm9, %v3218_v53, %v585_v9  ;;  %5306 = vst [vmem:[#allocation26_spill] sm:$0xff] %v3381_v55 }
 0x107   :  { %v288_v33 = vpop.f32.mrf.mxu0  ;;  %2502 = vrcp.f32 %v3318_v28  ;;  %v2493_v48 = vpop.eup %2492  ;;  %v608_v53 = vor.u32 1.1754944e-38, %v607_v27  ;;  %v3408_v27 = vor.u32 1.1754944e-38, %v622_v13  ;;  %v3412_v24 = vsel %vm3331_vm5, %v593_v61, %v589_v3 }
 0x108   :  { %v3342_v21 = vadd.f32 %v2853_v34, %v288_v33  ;;  %2504 = vrcp.f32 %v3326_v22  ;;  %v2495_v36 = vpop.eup %2494  ;;  %v3360_v49 = vadd.f32 1.0, %v2493_v48  ;;  %v614_v1 = vmul.f32 %v3296_v62, %v613_v12 }
 0x109   :  { %2506 = vrcp.f32 %v3316_v47  ;;  %v3386_v31 = vadd.f32 1.0, %v2495_v36  ;;  %v620_v36 = vand.u32 2147483647, %v3220_v60  ;;  %v937_v40 = vand.u32 2147483648, %v3326_v22 }
 0x10a   :  { %v2497_v26 = vpop.eup %2496  ;;  %v2220_v33 = vmul.f32 -1.442695, %v3342_v21  ;;  %2508 = vrcp.f32 %v3335_v29  ;;  %v3428_v3 = vpop.f32.mrf.mxu3  ;;  %v615_v50 = vadd.f32 %v3296_v62, %v614_v1  ;;  %vm931_vm14 = vweird.f32 %v3326_v22 }
 0x10b   :  { %v3355_v17 = vpop.eup %2498  ;;  %v3358_v6 = vadd.f32 1.0, %v2497_v26  ;;  %v604_v26 = vsel %vm3393_vm12, %v3234_v38, %v600_v20  ;;  %v637_v20 = vand.u32 2147483648, %v3287_v15  ;;  %5309 = vst [vmem:[#allocation27_spill] sm:$0xff] %v3428_v3  ;;  %vm3441_vm2 = vcmp.eq.f32.partialorder %v620_v36, 8.507059e+37 }
 0x10c   :  { %v3371_v32 = vpop.eup %2500  ;;  %2510 = vpow2.f32 %v2220_v33  ;;  %v627_v18 = vmul.f32 %v3355_v17, %v3287_v15  ;;  %v609_v61 = vsel %vm3373_vm10, %v608_v53, %v604_v26  ;;  %v935_v36 = vand.u32 2147483647, %v3326_v22 }
 0x10d   :  { %v3383_v48 = vpop.eup %2502  ;;  %2512 = vrcp.f32 %v3358_v6  ;;  %v642_v59 = vmul.f32 %v3371_v32, %v3298_v43  ;;  %vm632_vm5 = vweird.f32 %v3355_v17  ;;  %v619_v60 = vsel %vm3461_vm4, %v3296_v62, %v615_v50 }
 0x10e   :  { %v2505_v9 = vpop.eup %2504  ;;  %2514 = vrcp.f32 %v3360_v49  ;;  %v912_v58 = vmul.f32 %v3383_v48, %v3318_v28  ;;  %v628_v19 = vsub.f32 1.0, %v627_v18  ;;  %vm936_vm6 = vcmp.eq.f32.partialorder %v935_v36, 8.507059e+37  ;;  %vm3520_vm13 = vmor %vm631_vm0, %vm632_vm5 }
 0x10f   :  { %v3404_v33 = vpop.eup %2506  ;;  %v290_v46 = vpop.f32.mrf.mxu0  ;;  %v927_v23 = vmul.f32 %v2505_v9, %v3326_v22  ;;  %2516 = vrcp.f32 %v3386_v31  ;;  %vm932_vm15 = vweird.f32 %v2505_v9  ;;  %v643_v53 = vsub.f32 1.0, %v642_v59 }
 0x110   :  { %v3415_v12 = vadd.f32 %v2853_v34, %v290_v46  ;;  %v3421_v38 = vpop.eup %2508  ;;  %vm3451_vm3 = vmor %vm931_vm14, %vm932_vm15  ;;  %v629_v59 = vmul.f32 %v3355_v17, %v628_v19  ;;  %v650_v19 = vand.u32 2147483647, %v3298_v43  ;;  %v938_v22 = vor.u32 1.1754944e-38, %v937_v40 }
 0x111   :  { %v928_v13 = vsub.f32 1.0, %v927_v23  ;;  %vm916_vm7 = vweird.f32 %v3318_v28  ;;  %vm917_vm8 = vweird.f32 %v3383_v48  ;;  %vm646_vm9 = vweird.f32 %v3298_v43 }
 0x112   :  { %v2511_v46 = vpop.eup %2510  ;;  %v2221_v16 = vmul.f32 -1.442695, %v3415_v12  ;;  %v652_v40 = vand.u32 2147483648, %v3298_v43  ;;  %v3486_v62 = vadd.f32 %v3355_v17, %v629_v59  ;;  %vm647_vm10 = vweird.f32 %v3371_v32  ;;  %vm3506_vm11 = vmor %vm916_vm7, %vm917_vm8 }
 0x113   :  { %v3433_v2 = vpop.eup %2512  ;;  %v3435_v55 = vadd.f32 1.0, %v2511_v46  ;;  %v929_v23 = vmul.f32 %v2505_v9, %v928_v13  ;;  %v3449_v13 = vor.u32 1.1754944e-38, %v637_v20  ;;  %v913_v46 = vsub.f32 1.0, %v912_v58  ;;  %vm3544_vm15 = vmor %vm646_vm9, %vm647_vm10 }
 0x114   :  { %2518 = vpow2.f32 %v2221_v16  ;;  %v657_v4 = vmul.f32 %v3433_v2, %v3358_v6  ;;  %v3445_v1 = vpop.eup %2514  ;;  %v3466_v20 = vmul.f32 %v609_v61, %v3002_v8  ;;  %vm3512_vm12 = vcmp.eq.f32.partialorder %v650_v19, 8.507059e+37 }
 0x115   :  { %2520 = vrcp.f32 %v3435_v55  ;;  %v930_v3 = vadd.f32 %v2505_v9, %v929_v23  ;;  %v3468_v26 = vpop.eup %2516  ;;  %v644_v23 = vmul.f32 %v3371_v32, %v643_v53  ;;  %v914_v63 = vmul.f32 %v3383_v48, %v913_v46  ;;  %v3496_v53 = vpop.f32.mrf.mxu3 }
 0x116   :  { %v658_v58 = vsub.f32 1.0, %v657_v4  ;;  %v920_v4 = vand.u32 2147483647, %v3318_v28  ;;  %vm661_vm14 = vweird.f32 %v3358_v6  ;;  %v665_v18 = vand.u32 2147483647, %v3358_v6 }
 0x117   :  { %v3470_v11 = vpop.f32.mrf.mxu0  ;;  %v934_v8 = vsel %vm3451_vm3, %v2505_v9, %v930_v3  ;;  %v915_v3 = vadd.f32 %v3383_v48, %v914_v63  ;;  %v645_v59 = vadd.f32 %v3371_v32, %v644_v23  ;;  %v653_v23 = vor.u32 1.1754944e-38, %v652_v40 }
 0x118   :  { %v939_v61 = vsel %vm936_vm6, %v938_v22, %v934_v8  ;;  %v659_v46 = vmul.f32 %v3433_v2, %v658_v58  ;;  %v3527_v22 = vsel %vm3441_vm2, %v3408_v27, %v619_v60  ;;  %v667_v58 = vand.u32 2147483648, %v3358_v6 }
 0x119   :  { %v972_v30 = vmul.f32 %v939_v61, %v3207_v44  ;;  %v922_v44 = vand.u32 2147483648, %v3318_v28  ;;  %v897_v28 = vmul.f32 %v3468_v26, %v3386_v31  ;;  %v919_v60 = vsel %vm3506_vm11, %v3383_v48, %v915_v3 }
 0x11a   :  { %v2519_v0 = vpop.eup %2518  ;;  %vm921_vm0 = vcmp.eq.f32.partialorder %v920_v4, 8.507059e+37  ;;  %v3552_v40 = vadd.f32 %v3433_v2, %v659_v46  ;;  %vm662_vm2 = vweird.f32 %v3433_v2  ;;  %vm901_vm3 = vweird.f32 %v3386_v31 }
 0x11b   :  { %v3489_v50 = vpop.eup %2520  ;;  %v3491_v9 = vadd.f32 1.0, %v2519_v0  ;;  %993 = vmatpush.msrb.mxu2 %v972_v30  ;;  %v649_v30 = vsel %vm3544_vm15, %v3371_v32, %v645_v59  ;;  %v898_v8 = vsub.f32 1.0, %v897_v28  ;;  %vm902_vm4 = vweird.f32 %v3468_v26  ;;  %vm3567_vm6 = vmor %vm661_vm14, %vm662_vm2 }
 0x11c   :  { %v672_v16 = vmul.f32 %v3489_v50, %v3435_v55  ;;  %vm676_vm5 = vweird.f32 %v3435_v55  ;;  %v668_v48 = vor.u32 1.1754944e-38, %v667_v58  ;;  %v905_v4 = vand.u32 2147483647, %v3386_v31  ;;  %vm3591_vm9 = vmor %vm901_vm3, %vm902_vm4 }
 0x11d   :  { %2522 = vrcp.f32 %v3491_v9  ;;  %v680_v0 = vand.u32 2147483647, %v3435_v55  ;;  %v682_v27 = vand.u32 2147483648, %v3435_v55  ;;  %v3573_v28 = vpop.f32.mrf.mxu3  ;;  %vm677_vm7 = vweird.f32 %v3489_v50 }
 0x11e   :  { %v673_v19 = vsub.f32 1.0, %v672_v16  ;;  %v923_v16 = vor.u32 1.1754944e-38, %v922_v44  ;;  %v899_v44 = vmul.f32 %v3468_v26, %v898_v8  ;;  %v664_v58 = vsel %vm3567_vm6, %v3433_v2, %v3552_v40  ;;  %vm3612_vm14 = vmor %vm676_vm5, %vm677_vm7 }
 0x11f   :  { %v3536_v61 = vpop.f32.mrf.mxu0  ;;  %vm3581_vm8 = vcmp.eq.f32.partialorder %v665_v18, 8.507059e+37  ;;  %v907_v18 = vand.u32 2147483648, %v3386_v31  ;;  %v697_v63 = vand.u32 2147483648, %v3491_v9  ;;  %vm906_vm10 = vcmp.eq.f32.partialorder %v905_v4, 8.507059e+37 }
 0x120   :  { %v674_v43 = vmul.f32 %v3489_v50, %v673_v19  ;;  %v924_v3 = vsel %vm921_vm0, %v923_v16, %v919_v60  ;;  %v695_v60 = vand.u32 2147483647, %v3491_v9  ;;  %v900_v2 = vadd.f32 %v3468_v26, %v899_v44 }
 0x121   :  { %v971_v59 = vmul.f32 %v924_v3, %v3232_v42  ;;  %v654_v42 = vsel %vm3512_vm12, %v653_v23, %v649_v30  ;;  %v882_v23 = vmul.f32 %v3445_v1, %v3360_v49  ;;  %vm886_vm12 = vweird.f32 %v3360_v49 }
 0x122   :  { %v675_v16 = vadd.f32 %v3489_v50, %v674_v43  ;;  %v904_v3 = vsel %vm3591_vm9, %v3468_v26, %v900_v2  ;;  %v908_v43 = vor.u32 1.1754944e-38, %v907_v18  ;;  %v5332_v4 = vand.u32 2147483647, %v3287_v15 }
 0x123   :  { %v2523_v46 = vpop.eup %2522  ;;  %994 = vmatpush.msrb.mxu2 %v971_v59  ;;  %v883_v44 = vsub.f32 1.0, %v882_v23  ;;  %vm887_vm0 = vweird.f32 %v3445_v1  ;;  %v890_v26 = vand.u32 2147483647, %v3360_v49  ;;  %vm691_vm2 = vweird.f32 %v3491_v9 }
 0x124   :  { %v687_v19 = vmul.f32 %v2523_v46, %v3491_v9  ;;  %vm692_vm11 = vweird.f32 %v2523_v46  ;;  %vm3618_vm15 = vcmp.eq.f32.partialorder %v5332_v4, 8.507059e+37  ;;  %v679_v55 = vsel %vm3612_vm14, %v3489_v50, %v675_v16  ;;  %vm3646_vm5 = vmor %vm886_vm12, %vm887_vm0 }
 0x125   :  { %v892_v8 = vand.u32 2147483648, %v3360_v49  ;;  %vm3630_vm3 = vmor %vm691_vm2, %vm692_vm11  ;;  %v867_v9 = vmul.f32 %v3421_v38, %v3335_v29  ;;  %v3640_v23 = vadd.f32 %v2853_v34, %v3470_v11  ;;  %v698_v50 = vor.u32 1.1754944e-38, %v697_v63  ;;  %v3660_v63 = vld [vmem:[%s5196_s3] ss:$0 sm:$0xff] }
 0x126   :  { %v688_v40 = vsub.f32 1.0, %v687_v19  ;;  %v909_v19 = vsel %vm906_vm10, %v908_v43, %v904_v3  ;;  %vm681_vm4 = vcmp.eq.f32.partialorder %v680_v0, 8.507059e+37  ;;  %v683_v16 = vor.u32 1.1754944e-38, %v682_v27 }
 0x127   :  { %v3602_v30 = vpop.f32.mrf.mxu0  ;;  %v970_v18 = vmul.f32 %v909_v19, %v3238_v25  ;;  %v3650_v25 = vpop.f32.mrf.mxu3  ;;  %vm696_vm6 = vcmp.eq.f32.partialorder %v695_v60, 8.507059e+37  ;;  %vm891_vm7 = vcmp.eq.f32.partialorder %v890_v26, 8.507059e+37  ;;  %v669_v27 = vsel %vm3581_vm8, %v668_v48, %v664_v58 }
 0x128   :  { %v689_v32 = vmul.f32 %v2523_v46, %v688_v40  ;;  %v884_v40 = vmul.f32 %v3445_v1, %v883_v44  ;;  %v684_v0 = vsel %vm681_vm4, %v683_v16, %v679_v55  ;;  %v893_v49 = vor.u32 1.1754944e-38, %v892_v8 }
 0x129   :  { %995 = vmatpush.msrb.mxu2 %v970_v18  ;;  %v868_v31 = vsub.f32 1.0, %v867_v9  ;;  %vm871_vm8 = vweird.f32 %v3335_v29  ;;  %vm872_vm9 = vweird.f32 %v3421_v38  ;;  %v875_v48 = vand.u32 2147483647, %v3335_v29 }
 0x12a   :  { %v690_v2 = vadd.f32 %v2523_v46, %v689_v32  ;;  %v885_v34 = vadd.f32 %v3445_v1, %v884_v40  ;;  %v3664_v32 = vadd.f32 %v3660_v63, %v3536_v61  ;;  %v955_v6 = vmul.f32 %v684_v0, %v3342_v21  ;;  %vm3687_vm10 = vmor %vm871_vm8, %vm872_vm9  ;;  %v5372_v21 = vld [vmem:[#allocation16_spill] sm:$0xff] }
 0x12b   :  { %v877_v44 = vand.u32 2147483648, %v3335_v29  ;;  %v953_v26 = vmul.f32 %v654_v42, %v3204_v45  ;;  %v5339_v55 = vsel %vm3520_vm13, %v3355_v17, %v3486_v62  ;;  %v954_v29 = vmul.f32 %v669_v27, %v3270_v5 }
 0x12c   :  { %v694_v43 = vsel %vm3630_vm3, %v2523_v46, %v690_v2  ;;  %v889_v60 = vsel %vm3646_vm5, %v3445_v1, %v885_v34  ;;  %v2222_v1 = vmul.f32 -1.442695, %v3640_v23  ;;  %v639_v19 = vsel %vm3618_vm15, %v3449_v13, %v5339_v55  ;;  %v5351_v55 = vld [vmem:[#allocation24_spill] sm:$0xff] }
 0x12d   :  { %v699_v11 = vsel %vm696_vm6, %v698_v50, %v694_v43  ;;  %v894_v4 = vsel %vm891_vm7, %v893_v49, %v889_v60  ;;  %v3696_v45 = vadd.f32 %v3660_v63, %v3167_v51  ;;  %vm876_vm13 = vcmp.eq.f32.partialorder %v875_v48, 8.507059e+37 }
 0x12e   :  { %v956_v46 = vmul.f32 %v699_v11, %v3415_v12  ;;  %v969_v61 = vmul.f32 %v894_v4, %v3229_v37  ;;  %v869_v12 = vmul.f32 %v3421_v38, %v868_v31  ;;  %v852_v37 = vmul.f32 %v3404_v33, %v3316_v47 }
 0x12f   :  { %v300_v58 = vpop.f32.mrf.mxu0  ;;  %v878_v62 = vor.u32 1.1754944e-38, %v877_v44  ;;  %vm856_vm11 = vweird.f32 %v3316_v47  ;;  %v3703_v42 = vpop.f32.mrf.mxu3  ;;  %v2223_v59 = vmul.f32 -1.442695, %v3664_v32  ;;  %v3708_v5 = vadd.f32 %v3660_v63, %v3602_v30 }
 0x130   :  { %973 = vmatpush.msra.mxu1 %v956_v46  ;;  %996 = vmatpush.msrb.mxu2 %v969_v61  ;;  %v870_v17 = vadd.f32 %v3421_v38, %v869_v12  ;;  %v3700_v13 = vadd.f32 %v3660_v63, %v300_v58  ;;  %v853_v36 = vsub.f32 1.0, %v852_v37  ;;  %vm857_vm12 = vweird.f32 %v3404_v33  ;;  %v5348_v61 = vld [vmem:[#allocation17_spill] sm:$0xff]  ;;  %v5349_v12 = vld [vmem:[#allocation22_spill] sm:$0xff] }
 0x131   :  { %v951_v8 = vmul.f32 %v3527_v22, %v3071_v56  ;;  %v860_v18 = vand.u32 2147483647, %v3316_v47  ;;  %2524 = vpow2.f32 %v2222_v1  ;;  %v952_v30 = vmul.f32 %v639_v19, %v3132_v39  ;;  %vm3722_vm14 = vmor %vm856_vm11, %vm857_vm12  ;;  %v5354_v37 = vld [vmem:[#allocation26_spill] sm:$0xff] }
 0x132   :  { %974 = vmatpush.msra.mxu1 %v955_v6  ;;  %v874_v51 = vsel %vm3687_vm10, %v3421_v38, %v870_v17  ;;  %v854_v15 = vmul.f32 %v3404_v33, %v853_v36  ;;  %v862_v9 = vand.u32 2147483648, %v3316_v47  ;;  %v2225_v56 = vmul.f32 -1.442695, %v3700_v13 }
 0x133   :  { %v879_v2 = vsel %vm876_vm13, %v878_v62, %v874_v51  ;;  %vm861_vm15 = vcmp.eq.f32.partialorder %v860_v18, 8.507059e+37  ;;  %v837_v50 = vmul.f32 %v3323_v52, %v3248_v7  ;;  %2526 = vpow2.f32 %v2223_v59 }
 0x134   :  { %975 = vmatpush.msra.mxu1 %v954_v29  ;;  %v968_v40 = vmul.f32 %v879_v2, %v3165_v14  ;;  %v855_v22 = vadd.f32 %v3404_v33, %v854_v15  ;;  %v2224_v39 = vmul.f32 -1.442695, %v3708_v5  ;;  %v2330_v14 = vmul.f32 -1.442695, %v3696_v45 }
 0x135   :  { %v863_v16 = vor.u32 1.1754944e-38, %v862_v9  ;;  %v838_v3 = vsub.f32 1.0, %v837_v50  ;;  %v847_v43 = vand.u32 2147483648, %v3248_v7  ;;  %v822_v34 = vmul.f32 %v3253_v41, %v3161_v10  ;;  %v5356_v9 = vld [vmem:[#allocation25_spill] sm:$0xff] }
 0x136   :  { %976 = vmatpush.msra.mxu1 %v953_v26  ;;  %997 = vmatpush.msrb.mxu2 %v968_v40  ;;  %v859_v47 = vsel %vm3722_vm14, %v3404_v33, %v855_v22  ;;  %vm841_vm0 = vweird.f32 %v3248_v7  ;;  %vm842_vm2 = vweird.f32 %v3323_v52  ;;  %v845_v0 = vand.u32 2147483647, %v3248_v7  ;;  %v5350_v26 = vld [vmem:[#allocation4_spill] sm:$0xff] }
 0x137   :  { %v864_v11 = vsel %vm861_vm15, %v863_v16, %v859_v47  ;;  %2528 = vpow2.f32 %v2225_v56  ;;  %v3744_v27 = vadd.f32 %v3660_v63, %v3257_v35  ;;  %v839_v49 = vmul.f32 %v3323_v52, %v838_v3  ;;  %v3748_v46 = vpop.f32.mrf.mxu3  ;;  %v2525_v60 = vpop.eup %2524  ;;  %vm3760_vm5 = vmor %vm841_vm0, %vm842_vm2  ;;  %v5361_v47 = vld [vmem:[#allocation14_spill] sm:$0xff]  ;;  %v5362_v3 = vld [vmem:[#allocation20_spill] sm:$0xff] }
 0x138   :  { %977 = vmatpush.msra.mxu1 %v952_v30  ;;  %v967_v33 = vmul.f32 %v864_v11, %v3157_v57  ;;  %v949_v31 = vmul.f32 %v3412_v24, %v2985_v54  ;;  %v823_v4 = vsub.f32 1.0, %v822_v34  ;;  %vm826_vm3 = vweird.f32 %v3161_v10 }
 0x139   :  { %vm827_vm4 = vweird.f32 %v3253_v41  ;;  %2530 = vpow2.f32 %v2330_v14  ;;  %v840_v35 = vadd.f32 %v3323_v52, %v839_v49  ;;  %v830_v54 = vand.u32 2147483647, %v3161_v10  ;;  %v2527_v24 = vpop.eup %2526 }
 0x13a   :  { %978 = vmatpush.msra.mxu1 %v951_v8  ;;  %998 = vmatpush.msrb.mxu2 %v967_v33  ;;  %vm3765_vm6 = vcmp.eq.f32.partialorder %v845_v0, 8.507059e+37  ;;  %v824_v58 = vmul.f32 %v3253_v41, %v823_v4  ;;  %v832_v6 = vand.u32 2147483648, %v3161_v10  ;;  %v807_v7 = vmul.f32 %v5349_v12, %v5348_v61  ;;  %vm3782_vm7 = vmor %vm826_vm3, %vm827_vm4  ;;  %v5355_v8 = vld [vmem:[#allocation12_spill] sm:$0xff] }
 0x13b   :  { %v3773_v44 = vadd.f32 1.0, %v2525_v60  ;;  %2532 = vpow2.f32 %v2224_v39  ;;  %v2331_v1 = vmul.f32 -1.442695, %v3744_v27  ;;  %v947_v19 = vmul.f32 %v5351_v55, %v5350_v26  ;;  %v5358_v39 = vld [vmem:[#allocation9_spill] sm:$0xff] }
 0x13c   :  { %979 = vmatpush.msra.mxu1 %v3466_v20  ;;  %v848_v20 = vor.u32 1.1754944e-38, %v847_v43  ;;  %v844_v29 = vsel %vm3760_vm5, %v3323_v52, %v840_v35  ;;  %v825_v17 = vadd.f32 %v3253_v41, %v824_v58  ;;  %vm831_vm8 = vcmp.eq.f32.partialorder %v830_v54, 8.507059e+37  ;;  %v5365_v60 = vld [vmem:[#allocation21_spill] sm:$0xff]  ;;  %v5367_v54 = vld [vmem:[#allocation18_spill] sm:$0xff]  ;;  %v5368_v58 = vld [vmem:[#allocation19_spill] sm:$0xff] }
 0x13d   :  { %v833_v62 = vor.u32 1.1754944e-38, %v832_v6  ;;  %v2529_v36 = vpop.eup %2528  ;;  %v3791_v59 = vadd.f32 1.0, %v2527_v24  ;;  %v808_v51 = vsub.f32 1.0, %v807_v7  ;;  %vm811_vm9 = vweird.f32 %v5348_v61  ;;  %v5369_v7 = vld [vmem:[#allocation8_spill] sm:$0xff] }
 0x13e   :  { %980 = vmatpush.msra.mxu1 %v949_v31  ;;  %v849_v10 = vsel %vm3765_vm6, %v848_v20, %v844_v29  ;;  %v829_v52 = vsel %vm3782_vm7, %v3253_v41, %v825_v17  ;;  %vm812_vm10 = vweird.f32 %v5349_v12  ;;  %v815_v15 = vand.u32 2147483647, %v5348_v61  ;;  %v5357_v41 = vld [vmem:[#allocation23_spill] sm:$0xff] }
 0x13f   :  { %v966_v2 = vmul.f32 %v849_v10, %v5355_v8  ;;  %v3802_v18 = vpop.eup %2530  ;;  %v834_v30 = vsel %vm831_vm8, %v833_v62, %v829_v52  ;;  %v809_v40 = vmul.f32 %v5349_v12, %v808_v51  ;;  %v817_v38 = vand.u32 2147483648, %v5348_v61  ;;  %v3810_v22 = vpop.f32.mrf.mxu3  ;;  %vm3818_vm13 = vmor %vm811_vm9, %vm812_vm10  ;;  %v5366_v20 = vld [vmem:[#allocation11_spill] sm:$0xff]  ;;  %v5376_v51 = vld [vmem:[#allocation13_spill] sm:$0xff] }
 0x140   :  { %981 = vmatpush.msra.mxu1 %v5354_v37  ;;  %v3808_v56 = vadd.f32 %v3660_v63, %v5356_v9  ;;  %v3812_v50 = vadd.f32 1.0, %v2529_v36  ;;  %2534 = vpow2.f32 %v2331_v1  ;;  %v965_v14 = vmul.f32 %v834_v30, %v5358_v39  ;;  %v5375_v10 = vld [vmem:[#allocation7_spill] sm:$0xff] }
 0x141   :  { %999 = vmatpush.msrb.mxu2 %v966_v2  ;;  %v792_v43 = vmul.f32 %v5362_v3, %v5361_v47  ;;  %v2533_v34 = vpop.eup %2532  ;;  %v810_v11 = vadd.f32 %v5349_v12, %v809_v40  ;;  %vm3825_vm11 = vcmp.eq.f32.partialorder %v815_v15, 8.507059e+37  ;;  %v818_v33 = vor.u32 1.1754944e-38, %v817_v38  ;;  %v5377_v15 = vld [vmem:[#allocation15_spill] sm:$0xff] }
 0x142   :  { %982 = vmatpush.msra.mxu1 %v947_v19  ;;  %v2332_v49 = vmul.f32 -1.442695, %v3808_v56  ;;  %vm796_vm12 = vweird.f32 %v5361_v47  ;;  %vm797_vm14 = vweird.f32 %v5362_v3  ;;  %v800_v4 = vand.u32 2147483647, %v5361_v47  ;;  %v5387_v29 = vld [vmem:[#allocation27_spill] sm:$0xff] }
 0x143   :  { %1000 = vmatpush.msrb.mxu2 %v965_v14  ;;  %v793_v31 = vsub.f32 1.0, %v792_v43  ;;  %v814_v35 = vsel %vm3818_vm13, %v5349_v12, %v810_v11  ;;  %v802_v57 = vand.u32 2147483648, %v5361_v47  ;;  %v777_v24 = vmul.f32 %v5367_v54, %v5366_v20  ;;  %vm3848_vm15 = vmor %vm796_vm12, %vm797_vm14  ;;  %v5380_v47 = vld [vmem:[#allocation6_spill] sm:$0xff] }
 0x144   :  { %983 = vmatpush.msra.mxu1 %v5357_v41  ;;  %2536 = vpow2.f32 %v2332_v49  ;;  %v3840_v48 = vadd.f32 1.0, %v2533_v34  ;;  %v819_v6 = vsel %vm3825_vm11, %v818_v33, %v814_v35  ;;  %vm781_vm0 = vweird.f32 %v5366_v20  ;;  %v5381_v43 = vld [vmem:[#allocation10_spill] sm:$0xff] }
 0x145   :  { %2538 = vrcp.f32 %v3812_v50  ;;  %v794_v61 = vmul.f32 %v5362_v3, %v793_v31  ;;  %v964_v1 = vmul.f32 %v819_v6, %v5369_v7  ;;  %v803_v26 = vor.u32 1.1754944e-38, %v802_v57  ;;  %v2677_v7 = vld [vmem:[%s5195_s2 + $0x18] sm:$0xff] }
 0x146   :  { %984 = vmatpush.msra.mxu1 %v5365_v60  ;;  %v778_v55 = vsub.f32 1.0, %v777_v24  ;;  %v2535_v19 = vpop.eup %2534  ;;  %vm3855_vm2 = vcmp.eq.f32.partialorder %v800_v4, 8.507059e+37  ;;  %vm782_vm3 = vweird.f32 %v5367_v54  ;;  %v785_v17 = vand.u32 2147483647, %v5366_v20  ;;  %v5382_v60 = vld [vmem:[#allocation2_spill] sm:$0xff]  ;;  %v5385_v24 = vld [vmem:[#allocation5_spill] sm:$0xff] }
 0x147   :  { %v795_v37 = vadd.f32 %v5362_v3, %v794_v61  ;;  %2540 = vrcp.f32 %v3791_v59  ;;  %1001 = vmatpush.msrb.mxu2 %v964_v1  ;;  %v787_v36 = vand.u32 2147483648, %v5366_v20  ;;  %v762_v8 = vmul.f32 %v5376_v51, %v5375_v10  ;;  %v3866_v2 = vpop.f32.mrf.mxu3  ;;  %vm3875_vm4 = vmor %vm781_vm0, %vm782_vm3 }
 0x148   :  { %985 = vmatpush.msra.mxu1 %v5368_v58  ;;  %v779_v62 = vmul.f32 %v5367_v54, %v778_v55  ;;  %2542 = vrcp.f32 %v3840_v48  ;;  %vm766_vm5 = vweird.f32 %v5375_v10  ;;  %vm767_vm6 = vweird.f32 %v5376_v51 }
 0x149   :  { %v799_v52 = vsel %vm3848_vm15, %v5362_v3, %v795_v37  ;;  %v788_v41 = vor.u32 1.1754944e-38, %v787_v36  ;;  %v763_v39 = vsub.f32 1.0, %v762_v8  ;;  %v3886_v16 = vadd.f32 1.0, %v2535_v19  ;;  %vm3904_vm8 = vmor %vm766_vm5, %vm767_vm6 }
 0x14a   :  { %986 = vmatpush.msra.mxu1 %v5372_v21  ;;  %v2537_v40 = vpop.eup %2536  ;;  %v804_v38 = vsel %vm3855_vm2, %v803_v26, %v799_v52  ;;  %v780_v9 = vadd.f32 %v5367_v54, %v779_v62  ;;  %vm786_vm7 = vcmp.eq.f32.partialorder %v785_v17, 8.507059e+37  ;;  %v770_v34 = vand.u32 2147483647, %v5375_v10  ;;  %v5386_v21 = vld [vmem:[#allocation3_spill] sm:$0xff] }
 0x14b   :  { %v3884_v14 = vpop.eup %2538  ;;  %v963_v3 = vmul.f32 %v804_v38, %v5380_v47  ;;  %v3891_v11 = vadd.f32 1.0, %v2537_v40  ;;  %v764_v33 = vmul.f32 %v5376_v51, %v763_v39  ;;  %v772_v49 = vand.u32 2147483648, %v5375_v10  ;;  %v2678_v40 = vld [vmem:[%s5195_s2 + $0x10] sm:$0xff] }
 0x14c   :  { %987 = vmatpush.msra.mxu1 %v5377_v15  ;;  %v784_v0 = vsel %vm3875_vm4, %v5367_v54, %v780_v9  ;;  %2544 = vrcp.f32 %v3773_v44  ;;  %v3911_v35 = vadd.f32 1.0, %v3802_v18  ;;  %vm771_vm9 = vcmp.eq.f32.partialorder %v770_v34, 8.507059e+37 }
 0x14d   :  { %1002 = vmatpush.msrb.mxu2 %v963_v3  ;;  %v3908_v4 = vpop.eup %2540  ;;  %v789_v57 = vsel %vm786_vm7, %v788_v41, %v784_v0  ;;  %v765_v20 = vadd.f32 %v5376_v51, %v764_v33  ;;  %2546 = vrcp.f32 %v3886_v16  ;;  %v773_v6 = vor.u32 1.1754944e-38, %v772_v49 }
 0x14e   :  { %988 = vmatpush.msra.mxu1 %v5381_v43  ;;  %v3914_v54 = vpop.eup %2542  ;;  %v962_v58 = vmul.f32 %v789_v57, %v5385_v24  ;;  %v747_v61 = vmul.f32 %v3884_v14, %v3812_v50  ;;  %2548 = vrcp.f32 %v3891_v11  ;;  %vm751_vm10 = vweird.f32 %v3812_v50 }
 0x14f   :  { %v769_v18 = vsel %vm3904_vm8, %v5376_v51, %v765_v20  ;;  %vm752_vm13 = vweird.f32 %v3884_v14  ;;  %v3929_v1 = vpop.f32.mrf.mxu3  ;;  %v755_v55 = vand.u32 2147483647, %v3812_v50  ;;  %v757_v19 = vand.u32 2147483648, %v3812_v50 }
 0x150   :  { %1176 = vmatpush.bf16.msrb.mxu1 %v5382_v60  ;;  %1003 = vmatpush.msrb.mxu2 %v962_v58  ;;  %v774_v12 = vsel %vm771_vm9, %v773_v6, %v769_v18  ;;  %v748_v26 = vsub.f32 1.0, %v747_v61  ;;  %v3936_v17 = vadd.f32 %v3660_v63, %v5387_v29  ;;  %v732_v62 = vmul.f32 %v3914_v54, %v3840_v48  ;;  %vm3953_vm14 = vmor %vm751_vm10, %vm752_vm13 }
 0x151   :  { %v961_v37 = vmul.f32 %v774_v12, %v5386_v21  ;;  %2550 = vrcp.f32 %v3911_v35  ;;  %vm3944_vm11 = vcmp.eq.f32.partialorder %v755_v55, 8.507059e+37  ;;  %vm736_vm12 = vweird.f32 %v3840_v48 }
 0x152   :  { %v3940_v36 = vpop.eup %2544  ;;  %v749_v10 = vmul.f32 %v3884_v14, %v748_v26  ;;  %v758_v52 = vor.u32 1.1754944e-38, %v757_v19  ;;  %v2333_v15 = vmul.f32 -1.442695, %v3936_v17  ;;  %v733_v30 = vsub.f32 1.0, %v732_v62 }
 0x153   :  { %1004 = vmatpush.msrb.mxu2 %v961_v37  ;;  %vm737_vm15 = vweird.f32 %v3914_v54  ;;  %v3962_v38 = vpop.eup %2546  ;;  %v740_v50 = vand.u32 2147483647, %v3840_v48  ;;  %v742_v41 = vand.u32 2147483648, %v3840_v48  ;;  %v717_v39 = vmul.f32 %v3908_v4, %v3791_v59  ;;  %v2679_v48 = vld [vmem:[%s5195_s2 + $0x8] sm:$0xff] }
 0x154   :  { %1177 = vmatpush.bf16.msrb.mxu1 %v2677_v7  ;;  %v750_v9 = vadd.f32 %v3884_v14, %v749_v10  ;;  %v3969_v47 = vpop.eup %2548  ;;  %2552 = vpow2.f32 %v2333_v15  ;;  %v734_v3 = vmul.f32 %v3914_v54, %v733_v30  ;;  %vm3977_vm0 = vmor %vm736_vm12, %vm737_vm15  ;;  %vm721_vm2 = vweird.f32 %v3791_v59 }
 0x155   :  { %v743_v0 = vor.u32 1.1754944e-38, %v742_v41  ;;  %v718_v33 = vsub.f32 1.0, %v717_v39  ;;  %vm3985_vm3 = vcmp.eq.f32.partialorder %v740_v50, 8.507059e+37  ;;  %vm722_vm4 = vweird.f32 %v3908_v4 }
 0x156   :  { %v754_v43 = vsel %vm3953_vm14, %v3884_v14, %v750_v9  ;;  %v735_v60 = vadd.f32 %v3914_v54, %v734_v3  ;;  %v725_v58 = vand.u32 2147483647, %v3791_v59  ;;  %v727_v6 = vand.u32 2147483648, %v3791_v59  ;;  %vm4010_vm5 = vmor %vm721_vm2, %vm722_vm4  ;;  %v2680_v59 = vld [vmem:[%s5195_s2] sm:$0xff] }
 0x157   :  { %v759_v49 = vsel %vm3944_vm11, %v758_v52, %v754_v43  ;;  %v3993_v14 = vpop.f32.mrf.mxu3  ;;  %v3995_v57 = vpop.eup %2550  ;;  %v719_v24 = vmul.f32 %v3908_v4, %v718_v33  ;;  %v1586_v61 = vmul.f32 %v3962_v38, %v3886_v16  ;;  %v1601_v18 = vmul.f32 %v3969_v47, %v3891_v11 }
 0x158   :  { %1178 = vmatpush.bf16.msrb.mxu1 %v2678_v40  ;;  %v960_v20 = vmul.f32 %v759_v49, %v3700_v13  ;;  %v739_v7 = vsel %vm3977_vm0, %v3914_v54, %v735_v60  ;;  %v702_v12 = vmul.f32 %v3940_v36, %v3773_v44  ;;  %vm726_vm6 = vcmp.eq.f32.partialorder %v725_v58, 8.507059e+37 }
 0x159   :  { %v744_v26 = vsel %vm3985_vm3, %v743_v0, %v739_v7  ;;  %v720_v55 = vadd.f32 %v3908_v4, %v719_v24  ;;  %v728_v19 = vor.u32 1.1754944e-38, %v727_v6  ;;  %vm706_vm7 = vweird.f32 %v3773_v44 }
 0x15a   :  { %1005 = vmatpush.msrb.mxu2 %v960_v20  ;;  %v2553_v21 = vpop.eup %2552  ;;  %v959_v54 = vmul.f32 %v744_v26, %v3708_v5  ;;  %v703_v37 = vsub.f32 1.0, %v702_v12  ;;  %vm707_vm8 = vweird.f32 %v3940_v36  ;;  %v1571_v29 = vmul.f32 %v3995_v57, %v3911_v35 }
 0x15b   :  { %v4027_v62 = vadd.f32 1.0, %v2553_v21  ;;  %v724_v10 = vsel %vm4010_vm5, %v3908_v4, %v720_v55  ;;  %v710_v5 = vand.u32 2147483647, %v3773_v44  ;;  %v1602_v51 = vsub.f32 1.0, %v1601_v18  ;;  %vm708_vm9 = vmor %vm706_vm7, %vm707_vm8 }
 0x15c   :  { %1179 = vmatpush.bf16.msrb.mxu1 %v2679_v48  ;;  %1006 = vmatpush.msrb.mxu2 %v959_v54  ;;  %v729_v8 = vsel %vm726_vm6, %v728_v19, %v724_v10  ;;  %v704_v52 = vmul.f32 %v3940_v36, %v703_v37  ;;  %v712_v15 = vand.u32 2147483648, %v3773_v44  ;;  %v1587_v30 = vsub.f32 1.0, %v1586_v61 }
 0x15d   :  { %2554 = vrcp.f32 %v4027_v62  ;;  %v958_v40 = vmul.f32 %v729_v8, %v3664_v32  ;;  %vm711_vm10 = vcmp.eq.f32.partialorder %v710_v5, 8.507059e+37  ;;  %v1572_v41 = vsub.f32 1.0, %v1571_v29 }
 0x15e   :  { %v705_v9 = vadd.f32 %v3940_v36, %v704_v52  ;;  %v713_v4 = vor.u32 1.1754944e-38, %v712_v15  ;;  %v1603_v39 = vmul.f32 %v3969_v47, %v1602_v51  ;;  %v5227_v43 = vmov 0.00390625  }
 0x15f   :  { %v4040_v50 = vpop.f32.mrf.mxu3  ;;  %1007 = vmatpush.msrb.mxu2 %v958_v40  ;;  %989 = vmatmul.f32.vlgmr.msra.gmra.mxu1 %v5227_v43  ;;  %v1588_v44 = vmul.f32 %v3962_v38, %v1587_v30  ;;  %vm1575_vm13 = vweird.f32 %v3911_v35  ;;  %vm1605_vm11 = vweird.f32 %v3891_v11  ;;  %vm1606_vm12 = vweird.f32 %v3969_v47 }
 0x160   :  { %1180 = vmatpush.bf16.msrb.mxu1 %v2680_v59  ;;  %v709_v3 = vsel %vm708_vm9, %v3940_v36, %v705_v9  ;;  %v1573_v33 = vmul.f32 %v3995_v57, %v1572_v41  ;;  %vm1576_vm14 = vweird.f32 %v3995_v57  ;;  %vm1590_vm15 = vweird.f32 %v3886_v16  ;;  %vm4068_vm2 = vmor %vm1605_vm11, %vm1606_vm12 }
 0x161   :  { %v714_v34 = vsel %vm711_vm10, %v713_v4, %v709_v3  ;;  %v1611_v36 = vand.u32 2147483648, %v3891_v11  ;;  %vm1591_vm0 = vweird.f32 %v3962_v38  ;;  %v1604_v49 = vadd.f32 %v3969_v47, %v1603_v39  ;;  %vm4093_vm6 = vmor %vm1575_vm13, %vm1576_vm14 }
 0x162   :  { %v957_v32 = vmul.f32 %v714_v34, %v3640_v23  ;;  %v1609_v60 = vand.u32 2147483647, %v3891_v11  ;;  %v2375_v23 = vld [vmem:[%s5197_s0 + $0x80] sm:$0xff]  ;;  %v1589_v48 = vadd.f32 %v3962_v38, %v1588_v44  ;;  %v1594_v20 = vand.u32 2147483647, %v3886_v16  ;;  %vm4084_vm5 = vmor %vm1590_vm15, %vm1591_vm0 }
 0x163   :  { %v2555_v0 = vpop.eup %2554  ;;  %v1596_v24 = vand.u32 2147483648, %v3886_v16  ;;  %v1626_v6 = vand.u32 2147483648, %v4027_v62  ;;  %vm1620_vm3 = vweird.f32 %v4027_v62  ;;  %v1624_v18 = vand.u32 2147483647, %v4027_v62 }
 0x164   :  { %v1616_v31 = vmul.f32 %v2555_v0, %v4027_v62  ;;  %1008 = vmatpush.msrb.mxu2 %v957_v32  ;;  %vm1621_vm4 = vweird.f32 %v2555_v0  ;;  %v1579_v13 = vand.u32 2147483647, %v3911_v35  ;;  %v1581_v11 = vand.u32 2147483648, %v3911_v35 }
 0x165   :  { %1009 = vmatmul.f32.vlgmr.msrb.gmra.mxu2 %v5227_v43  ;;  %v1612_v26 = vor.u32 1.1754944e-38, %v1611_v36  ;;  %v1574_v55 = vadd.f32 %v3995_v57, %v1573_v33  ;;  %v1608_v21 = vsel %vm4068_vm2, %v3969_v47, %v1604_v49  ;;  %vm1610_vm7 = vcmp.eq.f32.partialorder %v1609_v60, 8.507059e+37  ;;  %vm1622_vm8 = vmor %vm1620_vm3, %vm1621_vm4 }
 0x166   :  { %v1617_v61 = vsub.f32 1.0, %v1616_v31  ;;  %v1597_v54 = vor.u32 1.1754944e-38, %v1596_v24  ;;  %v1627_v37 = vor.u32 1.1754944e-38, %v1626_v6  ;;  %v1593_v35 = vsel %vm4084_vm5, %v3962_v38, %v1589_v48 }
 0x167   :  { %v4076_v7 = vpop.f32.mrf.mxu3  ;;  %2302 = vmatmul.msk.bf16.vlgmr.msrb.gmra.mxu1 %vm191_vm1, %v2375_v23  ;;  %vm1595_vm9 = vcmp.eq.f32.partialorder %v1594_v20, 8.507059e+37  ;;  %vm1625_vm10 = vcmp.eq.f32.partialorder %v1624_v18, 8.507059e+37  ;;  %v1582_v29 = vor.u32 1.1754944e-38, %v1581_v11  ;;  %v1613_v10 = vsel %vm1610_vm7, %v1612_v26, %v1608_v21 }
 0x168   :  { %v1618_v16 = vmul.f32 %v2555_v0, %v1617_v61  ;;  %v1578_v47 = vsel %vm4093_vm6, %v3995_v57, %v1574_v55  ;;  %vm1580_vm13 = vcmp.eq.f32.partialorder %v1579_v13, 8.507059e+37  ;;  %v1598_v51 = vsel %vm1595_vm9, %v1597_v54, %v1593_v35  ;;  %v2376_v57 = vld [vmem:[%s5197_s0 + $0x88] sm:$0xff] }
 0x169   :  { %v1884_v62 = vmul.f32 %v1613_v10, %v3808_v56  ;;  %v1583_v30 = vsel %vm1580_vm13, %v1582_v29, %v1578_v47  ;;  %v1883_v38 = vmul.f32 %v1598_v51, %v3744_v27  ;;  %v4118_v9 = vadd.f32 %v3660_v63, %v3496_v53 }
 0x16a   :  { %v1619_v59 = vadd.f32 %v2555_v0, %v1618_v16  ;;  %v1882_v40 = vmul.f32 %v1583_v30, %v3696_v45  ;;  %v4130_v27 = vadd.f32 %v3660_v63, %v3650_v25  ;;  %v4135_v53 = vadd.f32 %v3660_v63, %v3703_v42 }
 0x16b   :  { %5404 = vst [vmem:[#allocation17_spill] sm:$0xff] %v4118_v9  ;;  %v2334_v45 = vmul.f32 -1.442695, %v4118_v9  ;;  %v4139_v41 = vadd.f32 %v3660_v63, %v3748_v46  ;;  %v4150_v3 = vadd.f32 %v3660_v63, %v3866_v2  ;;  %v4156_v46 = vadd.f32 %v3660_v63, %v3929_v1  ;;  %v2377_v2 = vld [vmem:[%s5197_s0 + $0x90] sm:$0xff]  ;;  %v2380_v9 = vld [vmem:[%s5197_s0 + $0xa8] sm:$0xff] }
 0x16c   :  { %v1623_v5 = vsel %vm1622_vm8, %v2555_v0, %v1619_v59  ;;  %5406 = vst [vmem:[#allocation4_spill] sm:$0xff] %v4130_v27  ;;  %v2336_v25 = vmul.f32 -1.442695, %v4130_v27  ;;  %v2337_v42 = vmul.f32 -1.442695, %v4135_v53  ;;  %v4162_v0 = vadd.f32 %v3660_v63, %v3993_v14 }
 0x16d   :  { %v1628_v8 = vsel %vm1625_vm10, %v1627_v37, %v1623_v5  ;;  %5407 = vst [vmem:[#allocation24_spill] sm:$0xff] %v4135_v53  ;;  %2556 = vpow2.f32 %v2334_v45  ;;  %v2338_v44 = vmul.f32 -1.442695, %v4139_v41  ;;  %v2340_v32 = vmul.f32 -1.442695, %v4150_v3  ;;  %v2378_v5 = vld [vmem:[%s5197_s0 + $0x98] sm:$0xff] }
 0x16e   :  { %v1885_v52 = vmul.f32 %v1628_v8, %v3936_v17  ;;  %v4124_v17 = vadd.f32 %v3660_v63, %v3573_v28  ;;  %5408 = vst [vmem:[#allocation26_spill] sm:$0xff] %v4139_v41  ;;  %v4143_v28 = vadd.f32 %v3660_v63, %v3810_v22  ;;  %v4169_v33 = vadd.f32 %v3660_v63, %v4040_v50 }
 0x16f   :  { %v1249_v15 = vpop.f32.mrf.mxu3  ;;  %5410 = vst [vmem:[#allocation25_spill] sm:$0xff] %v4150_v3  ;;  %v2341_v1 = vmul.f32 -1.442695, %v4156_v46  ;;  %v2342_v14 = vmul.f32 -1.442695, %v4162_v0  ;;  %v4182_v20 = vadd.f32 %v3660_v63, %v4076_v7 }
 0x170   :  { %1902 = vmatpush.msra.mxu1 %v1885_v52  ;;  %5405 = vst [vmem:[#allocation22_spill] sm:$0xff] %v4124_v17  ;;  %v2335_v4 = vmul.f32 -1.442695, %v4124_v17  ;;  %v2339_v22 = vmul.f32 -1.442695, %v4143_v28  ;;  %v4185_v58 = vadd.f32 %v3660_v63, %v1249_v15 }
 0x171   :  { %5409 = vst [vmem:[#allocation12_spill] sm:$0xff] %v4143_v28  ;;  %v2343_v31 = vmul.f32 -1.442695, %v4169_v33  ;;  %v2344_v18 = vmul.f32 -1.442695, %v4182_v20 }
 0x172   :  { %1903 = vmatpush.msra.mxu1 %v1884_v62  ;;  %2558 = vpow2.f32 %v2335_v4  ;;  %5411 = vst [vmem:[#allocation23_spill] sm:$0xff] %v4156_v46  ;;  %v2345_v12 = vmul.f32 -1.442695, %v4185_v58 }
 0x173   :  { %v2557_v34 = vpop.eup %2556  ;;  %2560 = vpow2.f32 %v2336_v25  ;;  %5412 = vst [vmem:[#allocation9_spill] sm:$0xff] %v4162_v0 }
 0x174   :  { %1904 = vmatpush.msra.mxu1 %v1883_v38  ;;  %2562 = vpow2.f32 %v2337_v42  ;;  %v4172_v49 = vadd.f32 1.0, %v2557_v34 }
 0x175   :  { %2564 = vpow2.f32 %v2338_v44 }
 0x176   :  { %1905 = vmatpush.msra.mxu1 %v1882_v40  ;;  %2566 = vpow2.f32 %v2339_v22 }
 0x177   :  { %v4120_v56 = vpop.f32.mrf.mxu3  ;;  %2303 = vmatmul.msk.bf16.gmra.mxu1 %vm191_vm1, %v2376_v57  ;;  %2568 = vpow2.f32 %v2340_v32 }
 0x178   :  { %v2559_v36 = vpop.eup %2558  ;;  %2570 = vpow2.f32 %v2341_v1  ;;  %v4237_v57 = vadd.f32 %v3660_v63, %v4120_v56 }
 0x179   :  { %v2561_v23 = vpop.eup %2560  ;;  %v4177_v48 = vadd.f32 1.0, %v2559_v36  ;;  %2572 = vrcp.f32 %v4172_v49 }
 0x17a   :  { %v2563_v50 = vpop.eup %2562  ;;  %2574 = vpow2.f32 %v2342_v14  ;;  %v4187_v61 = vadd.f32 1.0, %v2561_v23 }
 0x17b   :  { %v2565_v24 = vpop.eup %2564  ;;  %2576 = vpow2.f32 %v2343_v31  ;;  %v4191_v11 = vadd.f32 1.0, %v2563_v50 }
 0x17c   :  { %v2567_v6 = vpop.eup %2566  ;;  %2578 = vrcp.f32 %v4177_v48  ;;  %v4194_v7 = vadd.f32 1.0, %v2565_v24 }
 0x17d   :  { %v2569_v13 = vpop.eup %2568  ;;  %2580 = vpow2.f32 %v2344_v18  ;;  %v4196_v19 = vadd.f32 1.0, %v2567_v6 }
 0x17e   :  { %v2571_v55 = vpop.eup %2570  ;;  %2582 = vpow2.f32 %v2345_v12  ;;  %v4204_v54 = vadd.f32 1.0, %v2569_v13 }
 0x17f   :  { %v4145_v39 = vpop.f32.mrf.mxu3  ;;  %v4201_v16 = vpop.eup %2572  ;;  %2584 = vrcp.f32 %v4187_v61  ;;  %v4208_v59 = vadd.f32 1.0, %v2571_v55 }
 0x180   :  { %5413 = vst [vmem:[#allocation14_spill] sm:$0xff] %v4201_v16  ;;  %v2575_v37 = vpop.eup %2574  ;;  %2586 = vrcp.f32 %v4191_v11  ;;  %v4222_v8 = vadd.f32 %v3660_v63, %v4145_v39  ;;  %v4269_v1 = vmul.f32 %v4201_v16, %v4172_v49 }
 0x181   :  { %v2577_v35 = vpop.eup %2576  ;;  %2588 = vrcp.f32 %v4194_v7  ;;  %v4218_v51 = vadd.f32 1.0, %v2575_v37 }
 0x182   :  { %v4211_v10 = vpop.eup %2578  ;;  %2590 = vrcp.f32 %v4196_v19  ;;  %v4224_v52 = vadd.f32 1.0, %v2577_v35  ;;  %v2347_v39 = vmul.f32 -1.442695, %v4222_v8  ;;  %5415 = vst [vmem:[#allocation21_spill] sm:$0xff] %v4269_v1 }
 0x183   :  { %5414 = vst [vmem:[#allocation20_spill] sm:$0xff] %v4211_v10  ;;  %v2581_v47 = vpop.eup %2580  ;;  %2592 = vrcp.f32 %v4204_v54  ;;  %v4277_v31 = vmul.f32 %v4211_v10, %v4177_v48 }
 0x184   :  { %v2583_v62 = vpop.eup %2582  ;;  %v4229_v30 = vadd.f32 1.0, %v2581_v47  ;;  %vm1770_vm5 = vweird.f32 %v4224_v52 }
 0x185   :  { %v4226_v15 = vpop.eup %2584  ;;  %v4233_v40 = vadd.f32 1.0, %v2583_v62  ;;  %5416 = vst [vmem:[#allocation11_spill] sm:$0xff] %v4277_v31  ;;  %v2379_v62 = vld [vmem:[%s5197_s0 + $0xa0] sm:$0xff] }
 0x186   :  { %v4231_v38 = vpop.eup %2586  ;;  %v4282_v50 = vmul.f32 %v4226_v15, %v4187_v61  ;;  %vm1785_vm2 = vweird.f32 %v4229_v30 }
 0x187   :  { %v1257_v60 = vpop.f32.mrf.mxu3  ;;  %2304 = vmatmul.msk.bf16.gmra.mxu1 %vm191_vm1, %v2377_v2  ;;  %v4242_v4 = vpop.eup %2588  ;;  %v4265_v2 = vld [vmem:[%s5198_s1] sm:$0x3]  ;;  %v4292_v13 = vmul.f32 %v4231_v38, %v4191_v11  ;;  %vm1800_vm11 = vweird.f32 %v4233_v40 }
 0x188   :  { %v4240_v45 = vadd.f32 %v3660_v63, %v1257_v60  ;;  %v4247_v25 = vpop.eup %2590  ;;  %v1691_v34 = vmul.f32 %v4242_v4, %v4194_v7  ;;  %v2683_v60 = vmov 0  }
 0x189   :  { %v4250_v42 = vpop.eup %2592  ;;  %v1706_v36 = vmul.f32 %v4247_v25, %v4196_v19  ;;  %2404 = vset.pattern.permute.xlu0 %v2683_v60 }
 0x18a   :  { %v2348_v44 = vmul.f32 -1.442695, %v4240_v45  ;;  %v1721_v24 = vmul.f32 %v4250_v42, %v4204_v54  ;;  %1951 = vperm.xlu0 %2404, %v4265_v2   ;;  %v1692_v35 = vsub.f32 1.0, %v1691_v34 }
 0x18c   :  { %v1722_v43 = vsub.f32 1.0, %v1721_v24 }
 0x18f   :  { %v1259_v26 = vpop.f32.mrf.mxu3 }
 0x190   :  { %v4199_v21 = vadd.f32 %v3660_v63, %v1259_v26  ;;  %v2346_v63 = vmul.f32 -1.442695, %v4237_v57 }
 0x192   :  { %v2349_v29 = vmul.f32 -1.442695, %v4199_v21 }
 0x194   :  { %2594 = vpow2.f32 %v2349_v29 }
 0x195   :  { %2596 = vrcp.f32 %v4208_v59 }
 0x196   :  { %2598 = vrcp.f32 %v4218_v51 }
 0x197   :  { %2305 = vmatmul.msk.bf16.gmra.mxu1 %vm191_vm1, %v2378_v5  ;;  %2600 = vrcp.f32 %v4224_v52  ;;  %v4314_v5 = vmul.f32 %v4242_v4, %v1692_v35 }
 0x198   :  { %2602 = vrcp.f32 %v4229_v30 }
 0x199   :  { %2604 = vrcp.f32 %v4233_v40 }
 0x19a   :  { %v2595_v56 = vpop.eup %2594  ;;  %2606 = vpow2.f32 %v2347_v39  ;;  %v1707_v39 = vsub.f32 1.0, %v1706_v36  ;;  %v4337_v36 = vmul.f32 %v4250_v42, %v1722_v43 }
 0x19b   :  { %v4256_v22 = vpop.eup %2596  ;;  %v4260_v32 = vadd.f32 1.0, %v2595_v56  ;;  %2608 = vpow2.f32 %v2346_v63 }
 0x19c   :  { %v4273_v14 = vpop.eup %2598  ;;  %v1736_v12 = vmul.f32 %v4256_v22, %v4208_v59  ;;  %2610 = vpow2.f32 %v2348_v44  ;;  %v4325_v18 = vmul.f32 %v4247_v25, %v1707_v39 }
 0x19d   :  { %v4287_v6 = vpop.eup %2600  ;;  %2612 = vrcp.f32 %v4260_v32  ;;  %v1864_v27 = vand.u32 2147483647, %v4260_v32  ;;  %v1866_v44 = vand.u32 2147483648, %v4260_v32  ;;  %vm1860_vm12 = vweird.f32 %v4260_v32 }
 0x19e   :  { %v4296_v26 = vpop.eup %2602  ;;  %v1737_v55 = vsub.f32 1.0, %v1736_v12  ;;  %v4329_v12 = vmul.f32 %v4273_v14, %v4218_v51  ;;  %v4342_v39 = vmul.f32 %v4287_v6, %v4224_v52  ;;  %vm1771_vm6 = vweird.f32 %v4287_v6 }
 0x19f   :  { %v4301_v29 = vpop.eup %2604  ;;  %v1781_v24 = vmul.f32 %v4296_v26, %v4229_v30  ;;  %vm4374_vm0 = vcmp.eq.f32.partialorder %v1864_v27, 8.507059e+37  ;;  %v1867_v28 = vor.u32 1.1754944e-38, %v1866_v44 }
 0x1a0   :  { %v2607_v56 = vpop.eup %2606  ;;  %v1796_v35 = vmul.f32 %v4301_v29, %v4233_v40  ;;  %v4346_v63 = vmul.f32 %v4256_v22, %v1737_v55  ;;  %v1767_v23 = vsub.f32 1.0, %v4342_v39  ;;  %vm1801_vm15 = vweird.f32 %v4301_v29 }
 0x1a1   :  { %v2609_v34 = vpop.eup %2608  ;;  %v4311_v37 = vadd.f32 1.0, %v2607_v56  ;;  %v1782_v43 = vsub.f32 1.0, %v1781_v24  ;;  %vm4451_vm10 = vmor %vm1800_vm11, %vm1801_vm15  ;;  %vm1710_vm15 = vweird.f32 %v4196_v19 }
 0x1a2   :  { %v4322_v60 = vadd.f32 1.0, %v2609_v34  ;;  %v2611_v47 = vpop.eup %2610  ;;  %v1797_v41 = vsub.f32 1.0, %v1796_v35 }
 0x1a3   :  { %2614 = vrcp.f32 %v4311_v37  ;;  %v4334_v56 = vpop.eup %2612  ;;  %v4353_v17 = vadd.f32 1.0, %v2611_v47  ;;  %v1783_v34 = vmul.f32 %v4296_v26, %v1782_v43  ;;  %vm1830_vm3 = vweird.f32 %v4311_v37 }
 0x1a4   :  { %2616 = vrcp.f32 %v4322_v60  ;;  %v1856_v55 = vmul.f32 %v4334_v56, %v4260_v32  ;;  %vm1861_vm14 = vweird.f32 %v4334_v56  ;;  %v1834_v27 = vand.u32 2147483647, %v4311_v37 }
 0x1a5   :  { %2618 = vrcp.f32 %v4353_v17  ;;  %v1836_v46 = vand.u32 2147483648, %v4311_v37  ;;  %vm4391_vm4 = vmor %vm1860_vm12, %vm1861_vm14  ;;  %vm1815_vm7 = vweird.f32 %v4322_v60  ;;  %v1821_v32 = vand.u32 2147483648, %v4322_v60 }
 0x1a6   :  { %v1857_v24 = vsub.f32 1.0, %v1856_v55  ;;  %v1798_v55 = vmul.f32 %v4301_v29, %v1797_v41  ;;  %vm1845_vm9 = vweird.f32 %v4353_v17  ;;  %v1849_v0 = vand.u32 2147483647, %v4353_v17 }
 0x1a7   :  { %2306 = vmatmul.msk.bf16.gmra.mxu1 %vm191_vm1, %v2379_v62  ;;  %v2684_v62 = vmov 1   ;;  %vm1726_vm14 = vweird.f32 %v4250_v42  ;;  %v1822_v31 = vor.u32 1.1754944e-38, %v1821_v32  ;;  %v1776_v32 = vand.u32 2147483648, %v4224_v52 }
 0x1a8   :  { %2405 = vset.pattern.permute.xlu0 %v2684_v62  ;;  %v1858_v43 = vmul.f32 %v4334_v56, %v1857_v24  ;;  %v1819_v24 = vand.u32 2147483647, %v4322_v60 }
 0x1a9   :  { %v4364_v47 = vpop.eup %2614  ;;  %1958 = vperm.xlu0 %2405, %v4265_v2  }
 0x1aa   :  { %v4368_v35 = vpop.eup %2616  ;;  %v1826_v39 = vmul.f32 %v4364_v47, %v4311_v37  ;;  %vm1831_vm8 = vweird.f32 %v4364_v47  ;;  %v1859_v44 = vadd.f32 %v4334_v56, %v1858_v43 }
 0x1ab   :  { %v1811_v53 = vmul.f32 %v4368_v35, %v4322_v60  ;;  %v4400_v62 = vpop.eup %2618  ;;  %vm1816_vm13 = vweird.f32 %v4368_v35  ;;  %vm4417_vm12 = vmor %vm1830_vm3, %vm1831_vm8  ;;  %vm1786_vm3 = vweird.f32 %v4296_v26  ;;  %vm4485_vm8 = vcmp.eq.f32.partialorder %v1849_v0, 8.507059e+37 }
 0x1ac   :  { %v1827_v3 = vsub.f32 1.0, %v1826_v39  ;;  %v1841_v16 = vmul.f32 %v4400_v62, %v4353_v17  ;;  %v1863_v43 = vsel %vm4391_vm4, %v4334_v56, %v1859_v44  ;;  %vm1846_vm4 = vweird.f32 %v4400_v62 }
 0x1ad   :  { %v1812_v2 = vsub.f32 1.0, %v1811_v53  ;;  %v1868_v10 = vsel %vm4374_vm0, %v1867_v28, %v1863_v43  ;;  %v1768_v44 = vmul.f32 %v4287_v6, %v1767_v23  ;;  %vm4440_vm0 = vmor %vm1815_vm7, %vm1816_vm13  ;;  %vm4458_vm7 = vcmp.eq.f32.partialorder %v1834_v27, 8.507059e+37 }
 0x1ae   :  { %v1828_v39 = vmul.f32 %v4364_v47, %v1827_v3  ;;  %v1842_v41 = vsub.f32 1.0, %v1841_v16  ;;  %v1901_v37 = vmul.f32 %v1868_v10, %v4199_v21  ;;  %v1837_v16 = vor.u32 1.1754944e-38, %v1836_v46  ;;  %vm4471_vm11 = vmor %vm1845_vm9, %vm1846_vm4 }
 0x1af   :  { %v1813_v53 = vmul.f32 %v4368_v35, %v1812_v2  ;;  %v1851_v2 = vand.u32 2147483648, %v4353_v17  ;;  %v1799_v21 = vadd.f32 %v4301_v29, %v1798_v55  ;;  %v5429_v55 = vsub.f32 1.0, %v4329_v12  ;;  %vm4495_vm4 = vmor %vm1785_vm2, %vm1786_vm3 }
 0x1b0   :  { %v1829_v1 = vadd.f32 %v4364_v47, %v1828_v39  ;;  %v1806_v39 = vand.u32 2147483648, %v4233_v40  ;;  %v1843_v60 = vmul.f32 %v4400_v62, %v1842_v41  ;;  %1922 = vmatpush.msra.mxu2 %v1901_v37  ;;  %v1784_v43 = vadd.f32 %v4296_v26, %v1783_v34 }
 0x1b1   :  { %v1814_v56 = vadd.f32 %v4368_v35, %v1813_v53  ;;  %v1753_v53 = vmul.f32 %v4273_v14, %v5429_v55  ;;  %vm1711_vm13 = vweird.f32 %v4247_v25  ;;  %vm1756_vm9 = vweird.f32 %v4273_v14 }
 0x1b2   :  { %v1833_v23 = vsel %vm4417_vm12, %v4364_v47, %v1829_v1  ;;  %v1852_v47 = vor.u32 1.1754944e-38, %v1851_v2  ;;  %vm4480_vm12 = vcmp.eq.f32.partialorder %v1819_v24, 8.507059e+37  ;;  %v1844_v27 = vadd.f32 %v4400_v62, %v1843_v60 }
 0x1b3   :  { %v1818_v12 = vsel %vm4440_vm0, %v4368_v35, %v1814_v56  ;;  %v1807_v24 = vor.u32 1.1754944e-38, %v1806_v39  ;;  %v1838_v0 = vsel %vm4458_vm7, %v1837_v16, %v1833_v23  ;;  %vm1695_vm0 = vweird.f32 %v4194_v7 }
 0x1b4   :  { %v1769_v3 = vadd.f32 %v4287_v6, %v1768_v44  ;;  %v1803_v2 = vsel %vm4451_vm10, %v4301_v29, %v1799_v21  ;;  %v5438_v56 = vand.u32 2147483647, %v4233_v40  ;;  %v1848_v37 = vsel %vm4471_vm11, %v4400_v62, %v1844_v27 }
 0x1b5   :  { %v5443_v29 = vand.u32 2147483647, %v4229_v30  ;;  %v5446_v39 = vand.u32 2147483648, %v4229_v30  ;;  %v1823_v62 = vsel %vm4480_vm12, %v1822_v31, %v1818_v12  ;;  %v1853_v28 = vsel %vm4485_vm8, %v1852_v47, %v1848_v37  ;;  %v5472_v37 = vld [vmem:[#allocation11_spill] sm:$0xff] }
 0x1b6   :  { %vm4509_vm2 = vcmp.eq.f32.partialorder %v5438_v56, 8.507059e+37  ;;  %v1754_v16 = vadd.f32 %v4273_v14, %v1753_v53  ;;  %v1788_v21 = vsel %vm4495_vm4, %v4296_v26, %v1784_v43  ;;  %v1899_v10 = vmul.f32 %v1838_v0, %v4222_v8 }
 0x1b7   :  { %2307 = vmatmul.msk.bf16.gmra.mxu1 %vm191_vm1, %v2380_v9  ;;  %vm4520_vm1 = vmor %vm1770_vm5, %vm1771_vm6  ;;  %vm4526_vm10 = vcmp.eq.f32.partialorder %v5443_v29, 8.507059e+37  ;;  %v1792_v9 = vor.u32 1.1754944e-38, %v5446_v39  ;;  %vm1680_vm5 = vweird.f32 %v4191_v11  ;;  %v1900_v23 = vmul.f32 %v1853_v28, %v4240_v45  ;;  %v5474_v29 = vld [vmem:[#allocation20_spill] sm:$0xff] }
 0x1b8   :  { %v1744_v30 = vand.u32 2147483647, %v4208_v59  ;;  %v1746_v46 = vand.u32 2147483648, %v4208_v59  ;;  %vm5447_vm6 = vweird.f32 %v4218_v51  ;;  %v1777_v60 = vor.u32 1.1754944e-38, %v1776_v32 }
 0x1b9   :  { %vm4549_vm3 = vmor %vm5447_vm6, %vm1756_vm9  ;;  %v1808_v26 = vsel %vm4509_vm2, %v1807_v24, %v1803_v2  ;;  %vm1665_vm8 = vweird.f32 %v4187_v61  ;;  %v1739_v8 = vadd.f32 %v4256_v22, %v4346_v63  ;;  %v1773_v45 = vsel %vm4520_vm1, %v4287_v6, %v1769_v3  ;;  %1923 = vmatpush.msra.mxu2 %v1900_v23  ;;  %v5482_v23 = vld [vmem:[#allocation21_spill] sm:$0xff] }
 0x1ba   :  { %v5450_v55 = vand.u32 2147483647, %v4224_v52  ;;  %v1898_v43 = vmul.f32 %v1823_v62, %v4237_v57  ;;  %v1729_v1 = vand.u32 2147483647, %v4204_v54  ;;  %v1731_v47 = vand.u32 2147483648, %v4204_v54 }
 0x1bb   :  { %vm5453_vm11 = vweird.f32 %v4256_v22  ;;  %vm5454_vm12 = vweird.f32 %v4208_v59  ;;  %v5457_v52 = vand.u32 2147483648, %v4218_v51  ;;  %v1793_v12 = vsel %vm4526_vm10, %v1792_v9, %v1788_v21  ;;  %1924 = vmatpush.msra.mxu2 %v1899_v10  ;;  %v5481_v21 = vld [vmem:[#allocation9_spill] sm:$0xff] }
 0x1bc   :  { %vm4563_vm7 = vcmp.eq.f32.partialorder %v5450_v55, 8.507059e+37  ;;  %vm4574_vm9 = vmor %vm5454_vm12, %vm5453_vm11  ;;  %vm1650_vm4 = vweird.f32 %v4177_v48  ;;  %v1724_v57 = vadd.f32 %v4250_v42, %v4337_v36  ;;  %v1758_v34 = vsel %vm4549_vm3, %v4273_v14, %v1754_v16 }
 0x1bd   :  { %v1762_v6 = vor.u32 1.1754944e-38, %v5457_v52  ;;  %v5458_v59 = vand.u32 2147483647, %v4218_v51  ;;  %v1897_v17 = vmul.f32 %v1808_v26, %v4185_v58  ;;  %v5461_v32 = vsub.f32 1.0, %v4292_v13  ;;  %1925 = vmatpush.msra.mxu2 %v1898_v43  ;;  %v5491_v43 = vld [vmem:[#allocation23_spill] sm:$0xff] }
 0x1be   :  { %vm1696_vm1 = vweird.f32 %v4242_v4  ;;  %vm5462_vm10 = vweird.f32 %v4204_v54  ;;  %v1747_v51 = vor.u32 1.1754944e-38, %v1746_v46  ;;  %v1778_v36 = vsel %vm4563_vm7, %v1777_v60, %v1773_v45  ;;  %vm4628_vm7 = vmor %vm1710_vm15, %vm1711_vm13  ;;  %v5484_v46 = vld [vmem:[#allocation14_spill] sm:$0xff] }
 0x1bf   :  { %vm4590_vm2 = vcmp.eq.f32.partialorder %v5458_v59, 8.507059e+37  ;;  %v1678_v35 = vmul.f32 %v4231_v38, %v5461_v32  ;;  %vm4603_vm6 = vmor %vm5462_vm10, %vm1726_vm14  ;;  %vm1635_vm3 = vweird.f32 %v4172_v49  ;;  %v1709_v58 = vadd.f32 %v4247_v25, %v4325_v18  ;;  %1926 = vmatpush.msra.mxu2 %v1897_v17 }
 0x1c0   :  { %v1743_v13 = vsel %vm4574_vm9, %v4256_v22, %v1739_v8  ;;  %vm4615_vm11 = vcmp.eq.f32.partialorder %v1744_v30, 8.507059e+37  ;;  %v1896_v54 = vmul.f32 %v1793_v12, %v4182_v20  ;;  %v5467_v0 = vsub.f32 1.0, %v4282_v50  ;;  %vm4652_vm13 = vmor %vm1695_vm0, %vm1696_vm1 }
 0x1c1   :  { %vm1681_vm14 = vweird.f32 %v4231_v38  ;;  %v1732_v22 = vor.u32 1.1754944e-38, %v1731_v47  ;;  %v1763_v2 = vsel %vm4590_vm2, %v1762_v6, %v1758_v34  ;;  %v1694_v20 = vadd.f32 %v4242_v4, %v4314_v5  ;;  %v5496_v34 = vld [vmem:[#allocation25_spill] sm:$0xff] }
 0x1c2   :  { %v1663_v3 = vmul.f32 %v4226_v15, %v5467_v0  ;;  %v1728_v50 = vsel %vm4603_vm6, %v4250_v42, %v1724_v57  ;;  %vm4639_vm12 = vcmp.eq.f32.partialorder %v1729_v1, 8.507059e+37  ;;  %v1895_v41 = vmul.f32 %v1778_v36, %v4169_v33  ;;  %1927 = vmatpush.msra.mxu2 %v1896_v54  ;;  %vm4679_vm2 = vmor %vm1680_vm5, %vm1681_vm14 }
 0x1c3   :  { %v5473_v44 = vsub.f32 1.0, %v5472_v37  ;;  %vm1666_vm15 = vweird.f32 %v4226_v15  ;;  %v5477_v42 = vand.u32 2147483648, %v4196_v19  ;;  %v1748_v33 = vsel %vm4615_vm11, %v1747_v51, %v1743_v13 }
 0x1c4   :  { %v1679_v9 = vadd.f32 %v4231_v38, %v1678_v35  ;;  %v1713_v62 = vsel %vm4628_vm7, %v4247_v25, %v1709_v58  ;;  %v5478_v28 = vand.u32 2147483647, %v4196_v19  ;;  %v1894_v10 = vmul.f32 %v1763_v2, %v5481_v21  ;;  %1928 = vmatpush.msra.mxu2 %v1895_v41  ;;  %vm4704_vm10 = vmor %vm1665_vm8, %vm1666_vm15  ;;  %v5501_v58 = vld [vmem:[#allocation12_spill] sm:$0xff] }
 0x1c5   :  { %v1648_v40 = vmul.f32 %v5474_v29, %v5473_v44  ;;  %v1717_v39 = vor.u32 1.1754944e-38, %v5477_v42  ;;  %v5483_v30 = vsub.f32 1.0, %v5482_v23  ;;  %vm1651_vm0 = vweird.f32 %v5474_v29  ;;  %v5507_v41 = vld [vmem:[#allocation4_spill] sm:$0xff] }
 0x1c6   :  { %vm4666_vm9 = vcmp.eq.f32.partialorder %v5478_v28, 8.507059e+37  ;;  %v5487_v19 = vand.u32 2147483648, %v4194_v7  ;;  %v1733_v26 = vsel %vm4639_vm12, %v1732_v22, %v1728_v50  ;;  %v1664_v8 = vadd.f32 %v4226_v15, %v1663_v3  ;;  %1929 = vmatpush.msra.mxu2 %v1894_v10  ;;  %vm4725_vm8 = vmor %vm1650_vm4, %vm1651_vm0  ;;  %v5505_v3 = vld [vmem:[#allocation26_spill] sm:$0xff] }
 0x1c7   :  { %v1633_v31 = vmul.f32 %v5484_v46, %v5483_v30  ;;  %v1698_v45 = vsel %vm4652_vm13, %v4242_v4, %v1694_v20  ;;  %v5488_v55 = vand.u32 2147483647, %v4194_v7  ;;  %v1893_v1 = vmul.f32 %v1748_v33, %v5491_v43  ;;  %v5506_v20 = vld [vmem:[#allocation24_spill] sm:$0xff]  ;;  %v4767_v30 = vld [vmem:[%s5196_s3] ss:$0 sm:$0xff] }
 0x1c8   :  { %v1702_v60 = vor.u32 1.1754944e-38, %v5487_v19  ;;  %vm1636_vm5 = vweird.f32 %v5484_v46  ;;  %v1656_v47 = vand.u32 2147483648, %v4177_v48  ;;  %v5494_v7 = vand.u32 2147483648, %v4191_v11 }
 0x1c9   :  { %vm4693_vm1 = vcmp.eq.f32.partialorder %v5488_v55, 8.507059e+37  ;;  %v1718_v52 = vsel %vm4666_vm9, %v1717_v39, %v1713_v62  ;;  %v1649_v6 = vadd.f32 %v5474_v29, %v1648_v40  ;;  %v1683_v12 = vsel %vm4679_vm2, %v4231_v38, %v1679_v9  ;;  %1930 = vmatpush.msra.mxu2 %v1893_v1  ;;  %vm4744_vm4 = vmor %vm1635_vm3, %vm1636_vm5  ;;  %v5509_v40 = vld [vmem:[#allocation17_spill] sm:$0xff] }
 0x1ca   :  { %v1687_v4 = vor.u32 1.1754944e-38, %v5494_v7  ;;  %v5495_v57 = vand.u32 2147483647, %v4191_v11  ;;  %v1892_v59 = vmul.f32 %v1733_v26, %v5496_v34  ;;  %v1639_v27 = vand.u32 2147483647, %v4172_v49 }
 0x1cb   :  { %v1641_v17 = vand.u32 2147483648, %v4172_v49  ;;  %v5499_v38 = vand.u32 2147483648, %v4187_v61  ;;  %v1703_v11 = vsel %vm4693_vm1, %v1702_v60, %v1698_v45  ;;  %v1634_v14 = vadd.f32 %v5484_v46, %v1633_v31 }
 0x1cc   :  { %vm1685_vm6 = vcmp.eq.f32.partialorder %v5495_v57, 8.507059e+37  ;;  %v1668_v51 = vsel %vm4704_vm10, %v4226_v15, %v1664_v8  ;;  %v5500_v36 = vand.u32 2147483647, %v4187_v61  ;;  %v1891_v13 = vmul.f32 %v1718_v52, %v5501_v58  ;;  %1931 = vmatpush.msra.mxu2 %v1892_v59 }
 0x1cd   :  { %v1672_v35 = vor.u32 1.1754944e-38, %v5499_v38  ;;  %v1657_v54 = vor.u32 1.1754944e-38, %v1656_v47  ;;  %v1688_v0 = vsel %vm1685_vm6, %v1687_v4, %v1683_v12  ;;  %v1653_v15 = vsel %vm4725_vm8, %v5474_v29, %v1649_v6 }
 0x1ce   :  { %vm1670_vm11 = vcmp.eq.f32.partialorder %v5500_v36, 8.507059e+37  ;;  %v5504_v61 = vand.u32 2147483647, %v4177_v48  ;;  %v1890_v18 = vmul.f32 %v1703_v11, %v5505_v3  ;;  %v1642_v22 = vor.u32 1.1754944e-38, %v1641_v17  ;;  %1932 = vmatpush.msra.mxu2 %v1891_v13  ;;  %v5508_v48 = vld [vmem:[#allocation22_spill] sm:$0xff] }
 0x1cf   :  { %v1673_v2 = vsel %vm1670_vm11, %v1672_v35, %v1668_v51  ;;  %v1638_v49 = vsel %vm4744_vm4, %v5484_v46, %v1634_v14  ;;  %vm1640_vm3 = vcmp.eq.f32.partialorder %v1639_v27, 8.507059e+37  ;;  %v1889_v50 = vmul.f32 %v1688_v0, %v5506_v20  ;;  %v2408_v0 = vld [vmem:[%s5199_s4 + $0x1] ss:$0 sm:$0xff] }
 0x1d0   :  { %vm1655_vm14 = vcmp.eq.f32.partialorder %v5504_v61, 8.507059e+37  ;;  %v1888_v37 = vmul.f32 %v1673_v2, %v5507_v41  ;;  %1933 = vmatpush.msra.mxu2 %v1890_v18  ;;  %v1643_v44 = vsel %vm1640_vm3, %v1642_v22, %v1638_v49  ;;  %v5510_v42 = vmov 0.00390625  }
 0x1d1   :  { %v1658_v56 = vsel %vm1655_vm14, %v1657_v54, %v1653_v15  ;;  %v1886_v5 = vmul.f32 %v1643_v44, %v5509_v40  ;;  %v2407_v54 = vld [vmem:[%s5199_s4] ss:$0 sm:$0xff] }
 0x1d2   :  { %v1887_v29 = vmul.f32 %v1658_v56, %v5508_v48  ;;  %1934 = vmatpush.msra.mxu2 %v1889_v50 }
 0x1d4   :  { %1935 = vmatpush.msra.mxu2 %v1888_v37 }
 0x1d6   :  { %1936 = vmatpush.msra.mxu2 %v1887_v29 }
 0x1d8   :  { %1937 = vmatpush.msra.mxu2 %v1886_v5 }
 0x1d9   :  { %1938 = vmatmul.f32.vlgmr.msra.gmra.mxu2 %v5510_v42 }
 0x1dc   :  { %v4762_v39 = vpop.f32.mrf.mxu1 }
 0x1dd   :  { %5511 = vst [vmem:[#allocation18_spill] sm:$0xff] %v4762_v39 }
 0x1e4   :  { %v1182_v33 = vpop.f32.mrf.mxu1 }
 0x1e5   :  { %v4770_v46 = vadd.f32 %v4767_v30, %v1182_v33 }
 0x1e7   :  { %v2318_v60 = vmul.f32 -1.442695, %v4770_v46 }
 0x1e9   :  { %2620 = vpow2.f32 %v2318_v60 }
 0x1ec   :  { %v1184_v9 = vpop.f32.mrf.mxu1 }
 0x1ed   :  { %v4773_v31 = vadd.f32 %v4767_v30, %v1184_v9 }
 0x1ef   :  { %v2319_v8 = vmul.f32 -1.442695, %v4773_v31  ;;  %v2621_v27 = vpop.eup %2620 }
 0x1f0   :  { %v4809_v35 = vadd.f32 1.0, %v2621_v27 }
 0x1f1   :  { %2622 = vpow2.f32 %v2319_v8 }
 0x1f4   :  { %v1187_v62 = vpop.f32.mrf.mxu1 }
 0x1f5   :  { %v4776_v25 = vadd.f32 %v4767_v30, %v1187_v62  ;;  %v2409_v62 = vld [vmem:[%s5200_s5] ss:$0 sm:$0xff] }
 0x1f7   :  { %v2320_v55 = vmul.f32 -1.442695, %v4776_v25  ;;  %v2623_v32 = vpop.eup %2622 }
 0x1f8   :  { %v4811_v14 = vadd.f32 1.0, %v2623_v32 }
 0x1f9   :  { %2624 = vpow2.f32 %v2320_v55 }
 0x1fc   :  { %v1189_v28 = vpop.f32.mrf.mxu1  ;;  %v1952_v12 = vpop.permute.xlu0 %1951 }
 0x1fd   :  { %v4780_v26 = vadd.f32 %v4767_v30, %v1189_v28  ;;  %v1955_v41 = vmul.f32 %v2407_v54, %v1952_v12 }
 0x1ff   :  { %v2321_v1 = vmul.f32 -1.442695, %v4780_v26  ;;  %v2625_v38 = vpop.eup %2624 }
 0x200   :  { %v4813_v36 = vadd.f32 1.0, %v2625_v38 }
 0x201   :  { %2626 = vpow2.f32 %v2321_v1 }
 0x204   :  { %v1192_v16 = vpop.f32.mrf.mxu1 }
 0x205   :  { %v4784_v45 = vadd.f32 %v4767_v30, %v1192_v16 }
 0x207   :  { %v2322_v63 = vmul.f32 -1.442695, %v4784_v45  ;;  %v2627_v11 = vpop.eup %2626 }
 0x208   :  { %v4825_v61 = vadd.f32 1.0, %v2627_v11 }
 0x209   :  { %2628 = vpow2.f32 %v2322_v63 }
 0x20c   :  { %v1194_v21 = vpop.f32.mrf.mxu1 }
 0x20d   :  { %v4788_v53 = vadd.f32 %v4767_v30, %v1194_v21 }
 0x20f   :  { %v2323_v4 = vmul.f32 -1.442695, %v4788_v53  ;;  %v2629_v51 = vpop.eup %2628 }
 0x210   :  { %v4828_v22 = vadd.f32 1.0, %v2629_v51 }
 0x211   :  { %2630 = vpow2.f32 %v2323_v4 }
 0x214   :  { %v1197_v10 = vpop.f32.mrf.mxu1 }
 0x215   :  { %v4791_v43 = vadd.f32 %v4767_v30, %v1197_v10 }
 0x217   :  { %v2324_v52 = vmul.f32 -1.442695, %v4791_v43  ;;  %v2631_v13 = vpop.eup %2630 }
 0x218   :  { %v4832_v20 = vadd.f32 1.0, %v2631_v13 }
 0x219   :  { %2632 = vpow2.f32 %v2324_v52 }
 0x21b   :  { %v1959_v3 = vpop.permute.xlu0 %1958 }
 0x21c   :  { %v1199_v23 = vpop.f32.mrf.mxu1  ;;  %v1962_v37 = vmul.f32 %v2408_v0, %v1959_v3 }
 0x21d   :  { %v4795_v47 = vadd.f32 %v4767_v30, %v1199_v23 }
 0x21e   :  { %v1963_v28 = vadd.f32 %v1962_v37, %v1955_v41 }
 0x21f   :  { %v2325_v57 = vmul.f32 -1.442695, %v4795_v47  ;;  %v2633_v15 = vpop.eup %2632 }
 0x220   :  { %v4834_v56 = vadd.f32 1.0, %v2633_v15  ;;  %v4868_v60 = vadd.f32 %v2409_v62, %v1963_v28 }
 0x221   :  { %2634 = vpow2.f32 %v2325_v57 }
 0x222   :  { %v2350_v52 = vmul.f32 -1.442695, %v4868_v60  ;;  %vm1485_vm5 = vweird.f32 %v4834_v56 }
 0x224   :  { %v1202_v19 = vpop.f32.mrf.mxu1 }
 0x225   :  { %v4799_v7 = vadd.f32 %v4767_v30, %v1202_v19 }
 0x227   :  { %v2326_v59 = vmul.f32 -1.442695, %v4799_v7  ;;  %v2635_v18 = vpop.eup %2634 }
 0x228   :  { %v4837_v44 = vadd.f32 1.0, %v2635_v18 }
 0x229   :  { %2636 = vpow2.f32 %v2326_v59 }
 0x22a   :  { %vm1500_vm13 = vweird.f32 %v4837_v44 }
 0x22c   :  { %v1204_v6 = vpop.f32.mrf.mxu1 }
 0x22d   :  { %v4805_v34 = vadd.f32 %v4767_v30, %v1204_v6 }
 0x22f   :  { %v2327_v17 = vmul.f32 -1.442695, %v4805_v34  ;;  %v2637_v49 = vpop.eup %2636 }
 0x230   :  { %v4840_v48 = vadd.f32 1.0, %v2637_v49 }
 0x231   :  { %2638 = vpow2.f32 %v2327_v17 }
 0x232   :  { %2640 = vrcp.f32 %v4809_v35  ;;  %vm1515_vm12 = vweird.f32 %v4840_v48 }
 0x233   :  { %2642 = vrcp.f32 %v4811_v14 }
 0x234   :  { %v1207_v58 = vpop.f32.mrf.mxu1  ;;  %2644 = vrcp.f32 %v4813_v36 }
 0x235   :  { %v4816_v24 = vadd.f32 %v4767_v30, %v1207_v58 }
 0x237   :  { %v2328_v2 = vmul.f32 -1.442695, %v4816_v24  ;;  %v2639_v50 = vpop.eup %2638 }
 0x238   :  { %v4842_v29 = vpop.eup %2640  ;;  %v4845_v40 = vadd.f32 1.0, %v2639_v50 }
 0x239   :  { %2646 = vpow2.f32 %v2328_v2  ;;  %v4847_v33 = vpop.eup %2642  ;;  %v1391_v4 = vmul.f32 %v4842_v29, %v4809_v35 }
 0x23a   :  { %2648 = vrcp.f32 %v4825_v61  ;;  %v4856_v16 = vpop.eup %2644  ;;  %v1406_v12 = vmul.f32 %v4847_v33, %v4811_v14  ;;  %vm1530_vm8 = vweird.f32 %v4845_v40 }
 0x23b   :  { %2650 = vrcp.f32 %v4828_v22  ;;  %v1421_v59 = vmul.f32 %v4856_v16, %v4813_v36  ;;  %v1392_v58 = vsub.f32 1.0, %v1391_v4 }
 0x23c   :  { %2652 = vrcp.f32 %v4832_v20  ;;  %v1209_v5 = vpop.f32.mrf.mxu1  ;;  %v1407_v0 = vsub.f32 1.0, %v1406_v12 }
 0x23d   :  { %2654 = vrcp.f32 %v4834_v56  ;;  %v4851_v9 = vadd.f32 %v4767_v30, %v1209_v5  ;;  %v1422_v18 = vsub.f32 1.0, %v1421_v59  ;;  %v4910_v5 = vmul.f32 %v4842_v29, %v1392_v58 }
 0x23e   :  { %2656 = vrcp.f32 %v4837_v44  ;;  %v4913_v28 = vmul.f32 %v4847_v33, %v1407_v0 }
 0x23f   :  { %v2647_v21 = vpop.eup %2646  ;;  %2658 = vrcp.f32 %v4840_v48  ;;  %v2329_v10 = vmul.f32 -1.442695, %v4851_v9  ;;  %v4917_v12 = vmul.f32 %v4856_v16, %v1422_v18  ;;  %v1519_v18 = vand.u32 2147483647, %v4840_v48 }
 0x240   :  { %v4861_v23 = vpop.eup %2648  ;;  %2660 = vrcp.f32 %v4845_v40  ;;  %v4864_v30 = vadd.f32 1.0, %v2647_v21 }
 0x241   :  { %v4866_v19 = vpop.eup %2650  ;;  %2662 = vpow2.f32 %v2329_v10  ;;  %v1436_v27 = vmul.f32 %v4861_v23, %v4825_v61 }
 0x242   :  { %v4870_v8 = vpop.eup %2652  ;;  %2664 = vrcp.f32 %v4864_v30  ;;  %v1451_v17 = vmul.f32 %v4866_v19, %v4828_v22  ;;  %vm1545_vm2 = vweird.f32 %v4864_v30 }
 0x243   :  { %v4873_v55 = vpop.eup %2654  ;;  %v1466_v38 = vmul.f32 %v4870_v8, %v4832_v20  ;;  %2666 = vpow2.f32 %v2350_v52  ;;  %v1437_v2 = vsub.f32 1.0, %v1436_v27  ;;  %vm1471_vm1 = vweird.f32 %v4870_v8 }
 0x244   :  { %v4875_v1 = vpop.eup %2656  ;;  %v1481_v11 = vmul.f32 %v4873_v55, %v4834_v56  ;;  %v1452_v49 = vsub.f32 1.0, %v1451_v17  ;;  %vm1486_vm15 = vweird.f32 %v4873_v55 }
 0x245   :  { %v4877_v63 = vpop.eup %2658  ;;  %v1496_v15 = vmul.f32 %v4875_v1, %v4837_v44  ;;  %v1467_v41 = vsub.f32 1.0, %v1466_v38  ;;  %vm1501_vm7 = vweird.f32 %v4875_v1 }
 0x246   :  { %v4882_v6 = vpop.eup %2660  ;;  %v1511_v3 = vmul.f32 %v4877_v63, %v4840_v48  ;;  %v1482_v37 = vsub.f32 1.0, %v1481_v11  ;;  %v4923_v59 = vmul.f32 %v4866_v19, %v1452_v49  ;;  %vm1516_vm6 = vweird.f32 %v4877_v63 }
 0x247   :  { %v2663_v57 = vpop.eup %2662  ;;  %v1526_v13 = vmul.f32 %v4882_v6, %v4845_v40  ;;  %v1497_v10 = vsub.f32 1.0, %v1496_v15  ;;  %v4927_v38 = vmul.f32 %v4870_v8, %v1467_v41  ;;  %vm1531_vm9 = vweird.f32 %v4882_v6  ;;  %vm4990_vm14 = vmor %vm1515_vm12, %vm1516_vm6 }
 0x248   :  { %v4892_v32 = vpop.eup %2664  ;;  %v4898_v51 = vadd.f32 1.0, %v2663_v57  ;;  %v1512_v4 = vsub.f32 1.0, %v1511_v3  ;;  %v4920_v57 = vmul.f32 %v4861_v23, %v1437_v2  ;;  %v1483_v11 = vmul.f32 %v4873_v55, %v1482_v37  ;;  %vm4969_vm3 = vmor %vm1530_vm8, %vm1531_vm9 }
 0x249   :  { %v1541_v54 = vmul.f32 %v4892_v32, %v4864_v30  ;;  %v1527_v62 = vsub.f32 1.0, %v1526_v13  ;;  %v2667_v52 = vpop.eup %2666  ;;  %v1498_v15 = vmul.f32 %v4875_v1, %v1497_v10  ;;  %vm1546_vm0 = vweird.f32 %v4892_v32  ;;  %vm5007_vm12 = vmor %vm1500_vm13, %vm1501_vm7 }
 0x24a   :  { %2668 = vrcp.f32 %v4898_v51  ;;  %v1513_v3 = vmul.f32 %v4877_v63, %v1512_v4  ;;  %v4939_v2 = vadd.f32 1.0, %v2667_v52  ;;  %v1549_v41 = vand.u32 2147483647, %v4864_v30  ;;  %vm4960_vm11 = vmor %vm1545_vm2, %vm1546_vm0 }
 0x24b   :  { %v1542_v50 = vsub.f32 1.0, %v1541_v54  ;;  %v1528_v54 = vmul.f32 %v4882_v6, %v1527_v62  ;;  %v1551_v37 = vand.u32 2147483648, %v4864_v30  ;;  %v1566_v62 = vand.u32 2147483648, %v4898_v51  ;;  %vm5025_vm7 = vmor %vm1485_vm5, %vm1486_vm15 }
 0x24c   :  { %v1564_v52 = vand.u32 2147483647, %v4898_v51  ;;  %v1536_v30 = vand.u32 2147483648, %v4845_v40  ;;  %vm1560_vm0 = vweird.f32 %v4898_v51  ;;  %v1499_v58 = vadd.f32 %v4875_v1, %v1498_v15 }
 0x24d   :  { %v1543_v27 = vmul.f32 %v4892_v32, %v1542_v50  ;;  %v1529_v10 = vadd.f32 %v4882_v6, %v1528_v54  ;;  %v1514_v54 = vadd.f32 %v4877_v63, %v1513_v3  ;;  %v1521_v13 = vand.u32 2147483648, %v4840_v48 }
 0x24e   :  { %v1552_v39 = vor.u32 1.1754944e-38, %v1551_v37  ;;  %v1567_v3 = vor.u32 1.1754944e-38, %v1566_v62  ;;  %vm1441_vm9 = vweird.f32 %v4861_v23  ;;  %vm1455_vm8 = vweird.f32 %v4828_v22 }
 0x24f   :  { %v1544_v49 = vadd.f32 %v4892_v32, %v1543_v27  ;;  %v1534_v27 = vand.u32 2147483647, %v4845_v40  ;;  %vm1565_vm4 = vcmp.eq.f32.partialorder %v1564_v52, 8.507059e+37  ;;  %2670 = vrcp.f32 %v4939_v2 }
 0x250   :  { %v2669_v17 = vpop.eup %2668  ;;  %v1489_v48 = vand.u32 2147483647, %v4834_v56  ;;  %vm1411_vm6 = vweird.f32 %v4847_v33  ;;  %vm1396_vm13 = vweird.f32 %v4842_v29  ;;  %vm5524_vm5 = vweird.f32 %v4832_v20 }
 0x251   :  { %v1556_v0 = vmul.f32 %v2669_v17, %v4898_v51  ;;  %vm1561_vm10 = vweird.f32 %v2669_v17  ;;  %v1548_v40 = vsel %vm4960_vm11, %v4892_v32, %v1544_v49  ;;  %vm1550_vm11 = vcmp.eq.f32.partialorder %v1549_v41, 8.507059e+37 }
 0x252   :  { %vm1562_vm2 = vmor %vm1560_vm0, %vm1561_vm10  ;;  %v1484_v51 = vadd.f32 %v4873_v55, %v1483_v11  ;;  %v1537_v49 = vor.u32 1.1754944e-38, %v1536_v30  ;;  %v1553_v37 = vsel %vm1550_vm11, %v1552_v39, %v1548_v40  ;;  %vm1426_vm10 = vweird.f32 %v4856_v16 }
 0x253   :  { %v1557_v50 = vsub.f32 1.0, %v1556_v0  ;;  %v1533_v0 = vsel %vm4969_vm3, %v4882_v6, %v1529_v10  ;;  %vm1440_vm3 = vweird.f32 %v4825_v61  ;;  %v1518_v6 = vsel %vm4990_vm14, %v4877_v63, %v1514_v54  ;;  %vm5047_vm11 = vmor %vm5524_vm5, %vm1471_vm1 }
 0x254   :  { %vm1535_vm0 = vcmp.eq.f32.partialorder %v1534_v27, 8.507059e+37  ;;  %v1522_v11 = vor.u32 1.1754944e-38, %v1521_v13  ;;  %v1503_v63 = vsel %vm5007_vm12, %v4875_v1, %v1499_v58  ;;  %vm1520_vm14 = vcmp.eq.f32.partialorder %v1519_v18, 8.507059e+37 }
 0x255   :  { %v1558_v4 = vmul.f32 %v2669_v17, %v1557_v50  ;;  %v1538_v41 = vsel %vm1535_vm0, %v1537_v49, %v1533_v0  ;;  %v1880_v10 = vmul.f32 %v1553_v37, %v4816_v24  ;;  %v1476_v13 = vand.u32 2147483648, %v4832_v20  ;;  %v5051_v40 = vpop.eup %2670 }
 0x256   :  { %v1523_v1 = vsel %vm1520_vm14, %v1522_v11, %v1518_v6  ;;  %v1454_v24 = vadd.f32 %v4866_v19, %v4923_v59  ;;  %v1488_v58 = vsel %vm5025_vm7, %v4873_v55, %v1484_v51  ;;  %v1879_v18 = vmul.f32 %v1538_v41, %v4805_v34  ;;  %v2047_v59 = vld [vmem:[%s5202_s8 + $0x30] sm:$0xff] }
 0x257   :  { %v1559_v21 = vadd.f32 %v2669_v17, %v1558_v4  ;;  %v1474_v4 = vand.u32 2147483647, %v4832_v20  ;;  %v1459_v30 = vand.u32 2147483647, %v4828_v22  ;;  %v1461_v54 = vand.u32 2147483648, %v4828_v22  ;;  %v2049_v22 = vld [vmem:[%s5205_s9] sm:$0xff] }
 0x258   :  { %vm1395_vm0 = vweird.f32 %v4809_v35  ;;  %v1439_v34 = vadd.f32 %v4861_v23, %v4920_v57  ;;  %vm1490_vm12 = vcmp.eq.f32.partialorder %v1489_v48, 8.507059e+37  ;;  %v1878_v20 = vmul.f32 %v1523_v1, %v4799_v7 }
 0x259   :  { %v1563_v32 = vsel %vm1562_vm2, %v2669_v17, %v1559_v21  ;;  %v1491_v17 = vand.u32 2147483648, %v4834_v56  ;;  %vm1410_vm2 = vweird.f32 %v4811_v14  ;;  %v5523_v56 = vand.u32 2147483647, %v4837_v44 }
 0x25a   :  { %v1568_v62 = vsel %vm1565_vm4, %v1567_v3, %v1563_v32  ;;  %vm1425_vm4 = vweird.f32 %v4813_v36  ;;  %v1444_v3 = vand.u32 2147483647, %v4825_v61  ;;  %v1446_v0 = vand.u32 2147483648, %v4825_v61 }
 0x25b   :  { %v1881_v21 = vmul.f32 %v1568_v62, %v4851_v9  ;;  %v1469_v9 = vadd.f32 %v4870_v8, %v4927_v38  ;;  %v5522_v38 = vand.u32 2147483648, %v4837_v44  ;;  %vm1505_vm15 = vcmp.eq.f32.partialorder %v5523_v56, 8.507059e+37 }
 0x25c   :  { %v1492_v50 = vor.u32 1.1754944e-38, %v1491_v17  ;;  %vm5527_vm1 = vweird.f32 %v4866_v19  ;;  %v1477_v57 = vor.u32 1.1754944e-38, %v1476_v13  ;;  %vm1475_vm7 = vcmp.eq.f32.partialorder %v1474_v4, 8.507059e+37 }
 0x25d   :  { %1906 = vmatpush.msra.mxu1 %v1881_v21  ;;  %v1507_v27 = vor.u32 1.1754944e-38, %v5522_v38  ;;  %v1473_v44 = vsel %vm5047_vm11, %v4870_v8, %v1469_v9  ;;  %vm5066_vm14 = vmor %vm1455_vm8, %vm5527_vm1  ;;  %v1424_v8 = vadd.f32 %v4856_v16, %v4917_v12  ;;  %v1431_v49 = vand.u32 2147483648, %v4813_v36 }
 0x25e   :  { %v1493_v51 = vsel %vm1490_vm12, %v1492_v50, %v1488_v58  ;;  %v1458_v7 = vsel %vm5066_vm14, %v4866_v19, %v1454_v24  ;;  %vm5081_vm8 = vmor %vm1440_vm3, %vm1441_vm9  ;;  %v1462_v37 = vor.u32 1.1754944e-38, %v1461_v54  ;;  %v1478_v12 = vsel %vm1475_vm7, %v1477_v57, %v1473_v44  ;;  %v2046_v50 = vld [vmem:[%s5202_s8 + $0x28] sm:$0xff]  ;;  %v2041_v44 = vld [vmem:[%s5202_s8] sm:$0xff] }
 0x25f   :  { %1907 = vmatpush.msra.mxu1 %v1880_v10  ;;  %v1508_v55 = vsel %vm1505_vm15, %v1507_v27, %v1503_v63  ;;  %v1974_v62 = vmul.f32 %v5051_v40, %v4939_v2  ;;  %v1409_v19 = vadd.f32 %v4847_v33, %v4913_v28  ;;  %vm1460_vm15 = vcmp.eq.f32.partialorder %v1459_v30, 8.507059e+37  ;;  %vm5099_vm9 = vmor %vm1425_vm4, %vm1426_vm10  ;;  %v1989_v30 = vld [vmem:[%s5201_s6] sm:$0xff] }
 0x260   :  { %v1877_v15 = vmul.f32 %v1508_v55, %v4795_v47  ;;  %v1443_v47 = vsel %vm5081_vm8, %v4861_v23, %v1439_v34  ;;  %v1876_v6 = vmul.f32 %v1493_v51, %v4791_v43  ;;  %v1414_v61 = vand.u32 2147483647, %v4811_v14  ;;  %vm5114_vm10 = vmor %vm1410_vm2, %vm1411_vm6  ;;  %v2044_v55 = vld [vmem:[%s5202_s8 + $0x18] sm:$0xff]  ;;  %v2042_v34 = vld [vmem:[%s5202_s8 + $0x8] sm:$0xff] }
 0x261   :  { %1908 = vmatpush.msra.mxu1 %v1879_v18  ;;  %v1416_v21 = vand.u32 2147483648, %v4811_v14  ;;  %v1447_v28 = vor.u32 1.1754944e-38, %v1446_v0  ;;  %v1463_v17 = vsel %vm1460_vm15, %v1462_v37, %v1458_v7  ;;  %v1394_v23 = vadd.f32 %v4842_v29, %v4910_v5  ;;  %vm1397_vm6 = vmor %vm1395_vm0, %vm1396_vm13  ;;  %v5537_v57 = vld [vmem:[#allocation18_spill] sm:$0xff] }
 0x262   :  { %v1428_v43 = vsel %vm5099_vm9, %v4856_v16, %v1424_v8  ;;  %vm1445_vm3 = vcmp.eq.f32.partialorder %v1444_v3, 8.507059e+37  ;;  %v1875_v39 = vmul.f32 %v1478_v12, %v4788_v53  ;;  %v1401_v11 = vand.u32 2147483648, %v4809_v35 }
 0x263   :  { %1909 = vmatpush.msra.mxu1 %v1878_v20  ;;  %v1432_v9 = vor.u32 1.1754944e-38, %v1431_v49  ;;  %v1448_v5 = vsel %vm1445_vm3, %v1447_v28, %v1443_v47  ;;  %v1975_v63 = vsub.f32 1.0, %v1974_v62  ;;  %v1399_v10 = vand.u32 2147483647, %v4809_v35  ;;  %v1010_v20 = vpop.f32.mrf.mxu2  ;;  %v2050_v49 = vld [vmem:[%s5205_s9 + $0x8] sm:$0xff] }
 0x264   :  { %v1413_v53 = vsel %vm5114_vm10, %v4847_v33, %v1409_v19  ;;  %v5536_v16 = vand.u32 2147483647, %v4813_v36  ;;  %v1874_v4 = vmul.f32 %v1463_v17, %v4784_v45  ;;  %v1417_v14 = vor.u32 1.1754944e-38, %v1416_v21  ;;  %2069 = vmatpush.msrb.mxu2 %v2050_v49 }
 0x265   :  { %1910 = vmatpush.msra.mxu1 %v1877_v15  ;;  %v1398_v52 = vsel %vm1397_vm6, %v4842_v29, %v1394_v23  ;;  %vm1415_vm2 = vcmp.eq.f32.partialorder %v1414_v61, 8.507059e+37  ;;  %v1873_v38 = vmul.f32 %v1448_v5, %v4780_v26  ;;  %v1402_v33 = vor.u32 1.1754944e-38, %v1401_v11  ;;  %v2410_v15 = vld [vmem:[%s5203_s7] ss:$0 sm:$0xff] }
 0x266   :  { %vm1430_vm4 = vcmp.eq.f32.partialorder %v5536_v16, 8.507059e+37  ;;  %v1418_v27 = vsel %vm1415_vm2, %v1417_v14, %v1413_v53  ;;  %v1976_v36 = vmul.f32 %v5051_v40, %v1975_v63  ;;  %vm1400_vm5 = vcmp.eq.f32.partialorder %v1399_v10, 8.507059e+37  ;;  %2070 = vmatpush.msrb.mxu2 %v2049_v22 }
 0x267   :  { %1911 = vmatpush.msra.mxu1 %v1876_v6  ;;  %v1433_v13 = vsel %vm1430_vm4, %v1432_v9, %v1428_v43  ;;  %v1403_v1 = vsel %vm1400_vm5, %v1402_v33, %v1398_v52  ;;  %vm1978_vm11 = vweird.f32 %v4939_v2  ;;  %vm1979_vm13 = vweird.f32 %v5051_v40  ;;  %v2411_v9 = vld [vmem:[%s5204_s10] ss:$0 sm:$0xff] }
 0x268   :  { %v1872_v45 = vmul.f32 %v1433_v13, %v4776_v25  ;;  %v1871_v35 = vmul.f32 %v1418_v27, %v4773_v31  ;;  %v1984_v29 = vand.u32 2147483648, %v4939_v2  ;;  %v1977_v26 = vadd.f32 %v5051_v40, %v1976_v36  ;;  %vm1980_vm0 = vmor %vm1978_vm11, %vm1979_vm13  ;;  %v1992_v25 = vld [vmem:[%s5201_s6 + $0x18] sm:$0xff]  ;;  %v1991_v31 = vld [vmem:[%s5201_s6 + $0x10] sm:$0xff] }
 0x269   :  { %1912 = vmatpush.msra.mxu1 %v1875_v39  ;;  %v1982_v24 = vand.u32 2147483647, %v4939_v2  ;;  %v1870_v58 = vmul.f32 %v1403_v1, %v4770_v46  ;;  %v1990_v46 = vld [vmem:[%s5201_s6 + $0x8] sm:$0xff]  ;;  %vm1997_vm1 = vcmask 261120   ;;  %vm1945_vm14 = vcmask 1040384  }
 0x26a   :  { %v1985_v56 = vor.u32 1.1754944e-38, %v1984_v29  ;;  %v1981_v18 = vsel %vm1980_vm0, %v5051_v40, %v1977_v26  ;;  %v2043_v40 = vld [vmem:[%s5202_s8 + $0x10] sm:$0xff]  ;;  %v1011_v51 = vadd.f32 %v1010_v20, %v5537_v57  ;;  %vm2075_vm7 = vcmask 523264  }
 0x26b   :  { %1913 = vmatpush.msra.mxu1 %v1874_v4  ;;  %vm1983_vm12 = vcmp.eq.f32.partialorder %v1982_v24, 8.507059e+37  ;;  %v1939_v3 = vpop.f32.mrf.mxu2  ;;  %vm2051_vm10 = vcmask 130048   ;;  %vm2104_vm4 = vcmask 123904  }
 0x26c   :  { %v1986_v2 = vsel %vm1983_vm12, %v1985_v56, %v1981_v18 }
 0x26d   :  { %1914 = vmatpush.msra.mxu1 %v1873_v38  ;;  %v1988_v54 = vmul.f32 %v1986_v2, %v4868_v60  ;;  %v2045_v60 = vld [vmem:[%s5202_s8 + $0x20] sm:$0xff] }
 0x26f   :  { %1915 = vmatpush.msra.mxu1 %v1872_v45 }
 0x271   :  { %1916 = vmatpush.msra.mxu1 %v1871_v35 }
 0x273   :  { %1917 = vmatpush.msra.mxu1 %v1870_v58 }
 0x274   :  { %1918 = vmatmul.f32.vlgmr.msra.gmra.mxu1 %v5510_v42  ;;  %v2048_v42 = vld [vmem:[%s5202_s8 + $0x38] sm:$0xff] }
 0x275   :  { %2013 = vmatpush.msrb.mxu1 %v1992_v25 }
 0x277   :  { %2014 = vmatpush.msrb.mxu1 %v1991_v31 }
 0x279   :  { %2015 = vmatpush.msrb.mxu1 %v1990_v46 }
 0x27b   :  { %2016 = vmatpush.msrb.mxu1 %v1989_v30 }
 0x27c   :  { %2351 = vmatmul.msk.f32.vlgmr.msrb.gmra.mxu1 %vm1997_vm1, %v1988_v54 }
 0x27d   :  { %2087 = vmatpush.msra.mxu1 %v2048_v42 }
 0x27f   :  { %2088 = vmatpush.msra.mxu1 %v2047_v59 }
 0x281   :  { %2089 = vmatpush.msra.mxu1 %v2046_v50 }
 0x283   :  { %2090 = vmatpush.msra.mxu1 %v2045_v60 }
 0x285   :  { %2091 = vmatpush.msra.mxu1 %v2044_v55 }
 0x287   :  { %2092 = vmatpush.msra.mxu1 %v2043_v40 }
 0x289   :  { %2093 = vmatpush.msra.mxu1 %v2042_v34 }
 0x28b   :  { %2094 = vmatpush.msra.mxu1 %v2041_v44 }
 0x2f1   :  { %v1919_v0 = vpop.f32.mrf.mxu1 }
 0x2f2   :  { %v1940_v32 = vadd.f32 %v1939_v3, %v1919_v0 }
 0x2f4   :  { %v1943_v8 = vrot.slane %v1940_v32, 7 }
 0x2f6   :  { %v1946_v7 = vsel %vm1945_vm14, %v1011_v51, %v1943_v8 }
 0x2f7   :  { %2354 = vmatmul.msk.f32.vlgmr.msra.gmra.mxu1 %vm2075_vm7, %v1946_v7 }
 0x2f9   :  { %v2018_v37 = vpop.f32.mrf.mxu1 }
 0x2fa   :  { %v2019_v12 = vadd.f32 %v2410_v15, %v2018_v37 }
 0x2fc   :  { %v2352_v62 = vmul.f32 -1.442695, %v2019_v12 }
 0x2fe   :  { %2672 = vpow2.f32 %v2352_v62 }
 0x304   :  { %v2673_v19 = vpop.eup %2672 }
 0x305   :  { %v2024_v47 = vadd.f32 1.0, %v2673_v19 }
 0x307   :  { %2674 = vrcp.f32 %v2024_v47  ;;  %v2036_v48 = vand.u32 2147483648, %v2024_v47  ;;  %v2034_v17 = vand.u32 2147483647, %v2024_v47  ;;  %vm2030_vm15 = vweird.f32 %v2024_v47 }
 0x309   :  { %v2037_v43 = vor.u32 1.1754944e-38, %v2036_v48  ;;  %vm2035_vm3 = vcmp.eq.f32.partialorder %v2034_v17, 8.507059e+37 }
 0x30d   :  { %v2675_v6 = vpop.eup %2674 }
 0x30e   :  { %v2026_v61 = vmul.f32 %v2675_v6, %v2024_v47  ;;  %vm2031_vm8 = vweird.f32 %v2675_v6 }
 0x30f   :  { %vm2032_vm9 = vmor %vm2030_vm15, %vm2031_vm8 }
 0x310   :  { %v2027_v21 = vsub.f32 1.0, %v2026_v61 }
 0x312   :  { %v2028_v28 = vmul.f32 %v2675_v6, %v2027_v21 }
 0x314   :  { %v2029_v23 = vadd.f32 %v2675_v6, %v2028_v28 }
 0x316   :  { %v2033_v39 = vsel %vm2032_vm9, %v2675_v6, %v2029_v23 }
 0x317   :  { %v2038_v11 = vsel %vm2035_vm3, %v2037_v43, %v2033_v39 }
 0x318   :  { %v2040_v41 = vmul.f32 %v2038_v11, %v2019_v12 }
 0x31a   :  { %2353 = vmatmul.msk.f32.vlgmr.msrb.gmra.mxu2 %vm2051_vm10, %v2040_v41 }
 0x374   :  { %v2096_v5 = vpop.f32.mrf.mxu1 }
 0x39d   :  { %v2072_v63 = vpop.f32.mrf.mxu2 }
 0x39e   :  { %v2097_v10 = vadd.f32 %v2096_v5, %v2072_v63 }
 0x3a0   :  { %v2103_v53 = vadd.f32 %v2411_v9, %v2097_v10 }
 0x3a2   :  { %2105 = vst.msk [vmem:[%s5206_s11] sm:$0x3] %vm2104_vm4, %v2103_v53 }

</bundles_post_ra>
